<compile_context>
chip_gen: v5e
topology: v5e:2x2
jax: 0.10.0
libtpu: 0.0.40
codegen_flags: <defaults>
</compile_context>

<pallas_src>
import math

import jax
import jax.numpy as jnp
from jax.experimental import pallas as pl
from jax.experimental.pallas import tpu as pltpu

# ----- small synthetic BERT config -----
BATCH = 2
SEQ = 8
HIDDEN = 32
NUM_HEADS = 4
HEAD_DIM = HIDDEN // NUM_HEADS
INTERMEDIATE = 64
NUM_LAYERS = 2
VOCAB = 100
TYPE_VOCAB = 2
MAX_POS = 16
OUT_DIM = 1          # params['out_dim'] == 1 for the cross-encoder
OUT_PAD = 128        # lane-dense padded output width (only column 0 is the score)
LN_EPS = 1e-12


# ---------------- in-kernel helpers (pure jnp, traced inside the kernel) -----
def _layernorm(x, gamma, beta):
    mu = jnp.mean(x, axis=-1, keepdims=True)
    xc = x - mu
    var = jnp.mean(xc * xc, axis=-1, keepdims=True)
    inv = jax.lax.rsqrt(var + LN_EPS)
    return xc * inv * gamma + beta


def _gelu(x):
    # TODO(synk): original BERT GELU is erf-based; tanh approximation used here
    # (Mosaic-safe EUP transcendental), drift vs PyTorch reference ~1e-3.
    c = math.sqrt(2.0 / math.pi)
    return 0.5 * x * (1.0 + jnp.tanh(c * (x + 0.044715 * x * x * x)))


# ---------------- fused forward kernel (single grid step) --------------------
def _make_kernel(B, S):
    H, NH, D, L = HIDDEN, NUM_HEADS, HEAD_DIM, NUM_LAYERS
    ROWS = B * S
    TD = 3 * D   # per-head fused [q|k|v] column width (head-major weight layout)

    def kernel(emb_ref, mask_ref, eg_ref, eb_ref,
               wqkv_ref, bqkv_ref, wo_ref, bo_ref, g1_ref, b1_ref,
               w1_ref, bi1_ref, w2_ref, bi2_ref, g2_ref, b2_ref,
               wp_ref, bp_ref, wa_ref, ba_ref,
               out_ref):
        # --- embedding LayerNorm ---
        x = _layernorm(emb_ref[...], eg_ref[...], eb_ref[...])   # (ROWS, H)
        mask_n = mask_ref[...][:, None, :]                       # (NH*B, 1, S), hoisted

        # --- transformer layers: unrolled trace-time loop (L is tiny) ---
        for l in range(L):
            # fused QKV projection: ONE (ROWS,H)@(H,3H) MXU matmul.
            # Columns are head-major [h][q|k|v][d]; 1/sqrt(D) already folded into Q.
            qkv = jnp.dot(x, wqkv_ref[l],
                          preferred_element_type=jnp.float32) + bqkv_ref[l]  # (ROWS, 3H)

            # heads -> leading batch axis (n = h*B + b): NH chunk slices + one
            # leading-axis concat; no lane-axis transposes.
            qkv_h = jnp.concatenate(
                [qkv[:, h * TD:(h + 1) * TD].reshape(B, S, TD) for h in range(NH)],
                axis=0)                                           # (NH*B, S, 3D)
            q = qkv_h[:, :, 0:D]
            k = qkv_h[:, :, D:2 * D]
            v = qkv_h[:, :, 2 * D:3 * D]

            # single head-batched attention (one scores einsum, one softmax,
            # one context einsum per layer)
            scores = jnp.einsum('nqd,nkd->nqk', q, k,
                                preferred_element_type=jnp.float32) + mask_n
            scores = scores - jnp.max(scores, axis=-1, keepdims=True)
            p = jnp.exp(scores)
            p = p / jnp.sum(p, axis=-1, keepdims=True)            # exact normalization
            ctx_h = jnp.einsum('nqk,nkd->nqd', p, v,
                               preferred_element_type=jnp.float32)  # (NH*B, S, D)

            # back to token-major rows, head-major columns (matches Wo layout)
            ctx = jnp.concatenate(
                [ctx_h[h * B:(h + 1) * B] for h in range(NH)], axis=-1
            ).reshape(ROWS, H)

            attn = jnp.dot(ctx, wo_ref[l],
                           preferred_element_type=jnp.float32) + bo_ref[l]
            x = _layernorm(x + attn, g1_ref[l], b1_ref[l])

            # feed-forward
            hmid = _gelu(jnp.dot(x, w1_ref[l],
                                 preferred_element_type=jnp.float32) + bi1_ref[l])
            ffn = jnp.dot(hmid, w2_ref[l],
                          preferred_element_type=jnp.float32) + bi2_ref[l]
            x = _layernorm(x + ffn, g2_ref[l], b2_ref[l])

        # --- pooler on CLS rows only + additional_linear (lane-padded output) ---
        cls = x.reshape(B, S, H)[:, 0:1, :].reshape(B, H)         # (B, H)
        pooled = jnp.tanh(jnp.dot(cls, wp_ref[...],
                                  preferred_element_type=jnp.float32) + bp_ref[...])
        # dropout is eval-mode identity; wa/ba zero-padded to 128 lanes on the host
        out_ref[...] = jnp.dot(pooled, wa_ref[...],
                               preferred_element_type=jnp.float32) + ba_ref[...]

    return kernel


# ---------------- pallas_call wrapper -----------------------------------------
def cross_encoder_forward(params, token_idx_ctxt, segment_idx_ctxt, mask_ctxt):
    B, S = token_idx_ctxt.shape
    H, NH, D = HIDDEN, NUM_HEADS, HEAD_DIM

    # glue (plain JAX): embedding-table gathers
    pos_ids = jnp.arange(S, dtype=jnp.int32)
    emb = (params['word_emb'][token_idx_ctxt]
           + params['pos_emb'][pos_ids][None, :, :]
           + params['type_emb'][segment_idx_ctxt]).astype(jnp.float32)
    emb2d = emb.reshape(B * S, H)

    # HF-style extended attention mask: (1 - mask) * -10000, tiled per head
    # (n = h*B + b ordering, matching the in-kernel head stacking).
    mask_add = (1.0 - mask_ctxt.astype(jnp.float32)) * -10000.0   # (B, S)
    mask_n = jnp.tile(mask_add, (NH, 1))                          # (NH*B, S)

    # one-time host transforms:
    #  * fold 1/sqrt(head_dim) into the Q columns of Wqkv / bqkv
    #  * permute fused QKV columns from [q|k|v][h][d] to head-major [h][q|k|v][d]
    col_scale = jnp.concatenate(
        [jnp.full((H,), 1.0 / math.sqrt(D), jnp.float32),
         jnp.ones((2 * H,), jnp.float32)])
    perm = jnp.asarray([m * H + h * D + d
                        for h in range(NH) for m in range(3) for d in range(D)],
                       dtype=jnp.int32)
    wqkv = jnp.take(params['wqkv'] * col_scale, perm, axis=-1)    # (L, H, 3H)
    bqkv = jnp.take(params['bqkv'] * col_scale, perm, axis=-1)    # (L, 1, 3H)

    # pad additional_linear to 128 output lanes (unmasked stores); col 0 = score
    wa_pad = jnp.zeros((H, OUT_PAD), jnp.float32).at[:, :OUT_DIM].set(params['add_w'])
    ba_pad = jnp.zeros((1, OUT_PAD), jnp.float32).at[:, :OUT_DIM].set(params['add_b'])

    args = (emb2d, mask_n, params['emb_ln_g'], params['emb_ln_b'],
            wqkv, bqkv, params['wo'], params['bo'],
            params['ln1_g'], params['ln1_b'],
            params['w1'], params['b1'], params['w2'], params['b2'],
            params['ln2_g'], params['ln2_b'],
            params['pooler_w'], params['pooler_b'], wa_pad, ba_pad)

    vmem = pl.BlockSpec(memory_space=pltpu.MemorySpace.VMEM)
    out_pad = pl.pallas_call(
        _make_kernel(B, S),
        out_shape=jax.ShapeDtypeStruct((B, OUT_PAD), jnp.float32),
        in_specs=[vmem] * len(args),      # whole arrays resident in VMEM, no grid
        out_specs=vmem,
        # TODO(synk): at real BERT dims, switch to a layer grid with per-layer
        # BlockSpec weight streaming, bf16 MXU operands, and explicit
        # vmem_limit_bytes (v7x: 64 MiB VMEM, 2 TCs -> add a "parallel" row axis).
    )(*args)

    # additional_linear has out_dim == 1 -> squeeze(-1) => (B,)
    return out_pad[:, 0]


# ---------------- parameters (deterministic synthetic init) -------------------
def init_params(key):
    keys = iter(jax.random.split(key, 64))

    def norm(shape):
        return (0.02 * jax.random.normal(next(keys), shape)).astype(jnp.float32)

    def zeros(shape):
        return jnp.zeros(shape, jnp.float32)

    def ones(shape):
        return jnp.ones(shape, jnp.float32)

    L = NUM_LAYERS
    params = {
        'word_emb': norm((VOCAB, HIDDEN)),
        'pos_emb': norm((MAX_POS, HIDDEN)),
        'type_emb': norm((TYPE_VOCAB, HIDDEN)),
        'emb_ln_g': ones((1, HIDDEN)),
        'emb_ln_b': zeros((1, HIDDEN)),
        # per-layer weights stacked on a leading L axis; Q|K|V fused on out-features
        # (standard [Wq|Wk|Wv] column order; head-major permutation done in wrapper)
        'wqkv': norm((L, HIDDEN, 3 * HIDDEN)),
        'bqkv': zeros((L, 1, 3 * HIDDEN)),
        'wo': norm((L, HIDDEN, HIDDEN)),
        'bo': zeros((L, 1, HIDDEN)),
        'ln1_g': ones((L, 1, HIDDEN)),
        'ln1_b': zeros((L, 1, HIDDEN)),
        'w1': norm((L, HIDDEN, INTERMEDIATE)),
        'b1': zeros((L, 1, INTERMEDIATE)),
        'w2': norm((L, INTERMEDIATE, HIDDEN)),
        'b2': zeros((L, 1, HIDDEN)),
        'ln2_g': ones((L, 1, HIDDEN)),
        'ln2_b': zeros((L, 1, HIDDEN)),
        'pooler_w': norm((HIDDEN, HIDDEN)),
        'pooler_b': zeros((1, HIDDEN)),
        'add_w': norm((HIDDEN, OUT_DIM)),      # BertEncoder.additional_linear
        'add_b': zeros((1, OUT_DIM)),
    }
    return params


if __name__ == "__main__":
    key = jax.random.PRNGKey(0)
    pkey, ikey = jax.random.split(key)
    params = init_params(pkey)

    token_idx_ctxt = jax.random.randint(ikey, (BATCH, SEQ), 0, VOCAB, dtype=jnp.int32)
    segment_idx_ctxt = jnp.concatenate(
        [jnp.zeros((BATCH, SEQ // 2), jnp.int32),
         jnp.ones((BATCH, SEQ - SEQ // 2), jnp.int32)], axis=1)
    mask_ctxt = jnp.ones((BATCH, SEQ), jnp.int32).at[1, -2:].set(0)

    fwd = jax.jit(cross_encoder_forward)
    scores = fwd(params, token_idx_ctxt, segment_idx_ctxt, mask_ctxt)
    scores = jax.block_until_ready(scores)
    assert scores.shape == (BATCH,) and scores.dtype == jnp.float32
    print("KERNEL_OK")
</pallas_src>

<mosaic_0001>
module attributes {stable_mosaic.version = 11 : i64} {
  func.func @kernel(%arg0: memref<16x32xf32, #tpu.memory_space<vmem>>, %arg1: memref<8x8xf32, #tpu.memory_space<vmem>>, %arg2: memref<1x32xf32, #tpu.memory_space<vmem>>, %arg3: memref<1x32xf32, #tpu.memory_space<vmem>>, %arg4: memref<2x32x96xf32, #tpu.memory_space<vmem>>, %arg5: memref<2x1x96xf32, #tpu.memory_space<vmem>>, %arg6: memref<2x32x32xf32, #tpu.memory_space<vmem>>, %arg7: memref<2x1x32xf32, #tpu.memory_space<vmem>>, %arg8: memref<2x1x32xf32, #tpu.memory_space<vmem>>, %arg9: memref<2x1x32xf32, #tpu.memory_space<vmem>>, %arg10: memref<2x32x64xf32, #tpu.memory_space<vmem>>, %arg11: memref<2x1x64xf32, #tpu.memory_space<vmem>>, %arg12: memref<2x64x32xf32, #tpu.memory_space<vmem>>, %arg13: memref<2x1x32xf32, #tpu.memory_space<vmem>>, %arg14: memref<2x1x32xf32, #tpu.memory_space<vmem>>, %arg15: memref<2x1x32xf32, #tpu.memory_space<vmem>>, %arg16: memref<32x32xf32, #tpu.memory_space<vmem>>, %arg17: memref<1x32xf32, #tpu.memory_space<vmem>>, %arg18: memref<32x128xf32, #tpu.memory_space<vmem>>, %arg19: memref<1x128xf32, #tpu.memory_space<vmem>>, %arg20: memref<2x128xf32, #tpu.memory_space<vmem>>) attributes {dimension_semantics = [], scalar_prefetch = 0 : i64, scratch_operands = 0 : i64, tpu.core_type = #tpu.core_type<tc>} {
    %c0 = arith.constant 0 : index
    %c0_0 = arith.constant 0 : index
    %0 = vector.load %arg0[%c0, %c0_0] : memref<16x32xf32, #tpu.memory_space<vmem>>, vector<16x32xf32>
    %c0_1 = arith.constant 0 : index
    %c0_2 = arith.constant 0 : index
    %1 = vector.load %arg2[%c0_1, %c0_2] : memref<1x32xf32, #tpu.memory_space<vmem>>, vector<1x32xf32>
    %c0_3 = arith.constant 0 : index
    %c0_4 = arith.constant 0 : index
    %2 = vector.load %arg3[%c0_3, %c0_4] : memref<1x32xf32, #tpu.memory_space<vmem>>, vector<1x32xf32>
    %cst = arith.constant dense<0.000000e+00> : vector<16xf32>
    %3 = vector.multi_reduction <add>, %0, %cst [1] : vector<16x32xf32> to vector<16xf32>
    %4 = vector.shape_cast %3 : vector<16xf32> to vector<16x1xf32>
    %cst_5 = arith.constant 3.200000e+01 : f32
    %5 = vector.broadcast %cst_5 : f32 to vector<16x1xf32>
    %6 = arith.divf %4, %5 : vector<16x1xf32>
    %7 = vector.broadcast %6 : vector<16x1xf32> to vector<16x32xf32>
    %8 = arith.subf %0, %7 : vector<16x32xf32>
    %9 = arith.mulf %8, %8 : vector<16x32xf32>
    %cst_6 = arith.constant dense<0.000000e+00> : vector<16xf32>
    %10 = vector.multi_reduction <add>, %9, %cst_6 [1] : vector<16x32xf32> to vector<16xf32>
    %11 = vector.shape_cast %10 : vector<16xf32> to vector<16x1xf32>
    %cst_7 = arith.constant 3.200000e+01 : f32
    %12 = vector.broadcast %cst_7 : f32 to vector<16x1xf32>
    %13 = arith.divf %11, %12 : vector<16x1xf32>
    %cst_8 = arith.constant 9.99999996E-13 : f32
    %14 = vector.broadcast %cst_8 : f32 to vector<16x1xf32>
    %15 = arith.addf %13, %14 : vector<16x1xf32>
    %16 = math.rsqrt %15 : vector<16x1xf32>
    %17 = vector.broadcast %16 : vector<16x1xf32> to vector<16x32xf32>
    %18 = arith.mulf %8, %17 : vector<16x32xf32>
    %19 = vector.broadcast %1 : vector<1x32xf32> to vector<16x32xf32>
    %20 = arith.mulf %18, %19 : vector<16x32xf32>
    %21 = vector.broadcast %2 : vector<1x32xf32> to vector<16x32xf32>
    %22 = arith.addf %20, %21 : vector<16x32xf32>
    %c0_9 = arith.constant 0 : index
    %c0_10 = arith.constant 0 : index
    %23 = vector.load %arg1[%c0_9, %c0_10] : memref<8x8xf32, #tpu.memory_space<vmem>>, vector<8x8xf32>
    %24 = vector.shape_cast %23 : vector<8x8xf32> to vector<8x1x8xf32>
    %c0_11 = arith.constant 0 : index
    %c0_12 = arith.constant 0 : index
    %c0_13 = arith.constant 0 : index
    %25 = vector.load %arg4[%c0_11, %c0_12, %c0_13] : memref<2x32x96xf32, #tpu.memory_space<vmem>>, vector<1x32x96xf32>
    %26 = vector.shape_cast %25 : vector<1x32x96xf32> to vector<32x96xf32>
    %cst_14 = arith.constant dense<0.000000e+00> : vector<16x96xf32>
    %27 = tpu.matmul %22, %26, %cst_14 {dimension_numbers = #tpu.dot_dimension_numbers<[1], [0], [0], [1], [0, 0, 1, 1], [], []>} : vector<16x32xf32>, vector<32x96xf32>, vector<16x96xf32> -> vector<16x96xf32>
    %c0_15 = arith.constant 0 : index
    %c0_16 = arith.constant 0 : index
    %c0_17 = arith.constant 0 : index
    %28 = vector.load %arg5[%c0_15, %c0_16, %c0_17] : memref<2x1x96xf32, #tpu.memory_space<vmem>>, vector<1x1x96xf32>
    %29 = vector.shape_cast %28 : vector<1x1x96xf32> to vector<1x96xf32>
    %30 = vector.broadcast %29 : vector<1x96xf32> to vector<16x96xf32>
    %31 = arith.addf %27, %30 : vector<16x96xf32>
    %32 = vector.extract_strided_slice %31 {offsets = [0, 0], sizes = [16, 24], strides = [1, 1]} : vector<16x96xf32> to vector<16x24xf32>
    %33 = vector.shape_cast %32 : vector<16x24xf32> to vector<2x8x24xf32>
    %34 = vector.extract_strided_slice %31 {offsets = [0, 24], sizes = [16, 24], strides = [1, 1]} : vector<16x96xf32> to vector<16x24xf32>
    %35 = vector.shape_cast %34 : vector<16x24xf32> to vector<2x8x24xf32>
    %36 = vector.extract_strided_slice %31 {offsets = [0, 48], sizes = [16, 24], strides = [1, 1]} : vector<16x96xf32> to vector<16x24xf32>
    %37 = vector.shape_cast %36 : vector<16x24xf32> to vector<2x8x24xf32>
    %38 = vector.extract_strided_slice %31 {offsets = [0, 72], sizes = [16, 24], strides = [1, 1]} : vector<16x96xf32> to vector<16x24xf32>
    %39 = vector.shape_cast %38 : vector<16x24xf32> to vector<2x8x24xf32>
    %40 = tpu.concatenate %33, %35, %37, %39 in 0 : vector<2x8x24xf32>, vector<2x8x24xf32>, vector<2x8x24xf32>, vector<2x8x24xf32> -> vector<8x8x24xf32>
    %41 = vector.extract_strided_slice %40 {offsets = [0, 0, 0], sizes = [8, 8, 8], strides = [1, 1, 1]} : vector<8x8x24xf32> to vector<8x8x8xf32>
    %42 = vector.extract_strided_slice %40 {offsets = [0, 0, 8], sizes = [8, 8, 8], strides = [1, 1, 1]} : vector<8x8x24xf32> to vector<8x8x8xf32>
    %43 = vector.extract_strided_slice %40 {offsets = [0, 0, 16], sizes = [8, 8, 8], strides = [1, 1, 1]} : vector<8x8x24xf32> to vector<8x8x8xf32>
    "tpu.trace_start"() <{level = 10 : i32, message = "nqd,nkd->nqk"}> : () -> ()
    %cst_18 = arith.constant dense<0.000000e+00> : vector<8x8x8xf32>
    %44 = tpu.matmul %41, %42, %cst_18 {dimension_numbers = #tpu.dot_dimension_numbers<[2], [2], [1], [1], [0, 0, 0, 1, 1, 1], [0], [0]>} : vector<8x8x8xf32>, vector<8x8x8xf32>, vector<8x8x8xf32> -> vector<8x8x8xf32>
    "tpu.trace_stop"() : () -> ()
    %45 = vector.broadcast %24 : vector<8x1x8xf32> to vector<8x8x8xf32>
    %46 = arith.addf %44, %45 : vector<8x8x8xf32>
    %cst_19 = arith.constant dense<0xFF800000> : vector<8x8xf32>
    %47 = vector.multi_reduction <maximumf>, %46, %cst_19 [2] : vector<8x8x8xf32> to vector<8x8xf32>
    %48 = vector.shape_cast %47 : vector<8x8xf32> to vector<8x8x1xf32>
    %49 = vector.broadcast %48 : vector<8x8x1xf32> to vector<8x8x8xf32>
    %50 = arith.subf %46, %49 : vector<8x8x8xf32>
    %51 = math.exp %50 : vector<8x8x8xf32>
    %cst_20 = arith.constant dense<0.000000e+00> : vector<8x8xf32>
    %52 = vector.multi_reduction <add>, %51, %cst_20 [2] : vector<8x8x8xf32> to vector<8x8xf32>
    %53 = vector.shape_cast %52 : vector<8x8xf32> to vector<8x8x1xf32>
    %54 = vector.broadcast %53 : vector<8x8x1xf32> to vector<8x8x8xf32>
    %55 = arith.divf %51, %54 : vector<8x8x8xf32>
    "tpu.trace_start"() <{level = 10 : i32, message = "nqk,nkd->nqd"}> : () -> ()
    %cst_21 = arith.constant dense<0.000000e+00> : vector<8x8x8xf32>
    %56 = tpu.matmul %55, %43, %cst_21 {dimension_numbers = #tpu.dot_dimension_numbers<[2], [1], [1], [2], [0, 0, 0, 1, 1, 2], [0], [0]>} : vector<8x8x8xf32>, vector<8x8x8xf32>, vector<8x8x8xf32> -> vector<8x8x8xf32>
    "tpu.trace_stop"() : () -> ()
    %57 = vector.extract_strided_slice %56 {offsets = [0, 0, 0], sizes = [2, 8, 8], strides = [1, 1, 1]} : vector<8x8x8xf32> to vector<2x8x8xf32>
    %58 = vector.extract_strided_slice %56 {offsets = [2, 0, 0], sizes = [2, 8, 8], strides = [1, 1, 1]} : vector<8x8x8xf32> to vector<2x8x8xf32>
    %59 = vector.extract_strided_slice %56 {offsets = [4, 0, 0], sizes = [2, 8, 8], strides = [1, 1, 1]} : vector<8x8x8xf32> to vector<2x8x8xf32>
    %60 = vector.extract_strided_slice %56 {offsets = [6, 0, 0], sizes = [2, 8, 8], strides = [1, 1, 1]} : vector<8x8x8xf32> to vector<2x8x8xf32>
    %61 = tpu.concatenate %57, %58, %59, %60 in 2 : vector<2x8x8xf32>, vector<2x8x8xf32>, vector<2x8x8xf32>, vector<2x8x8xf32> -> vector<2x8x32xf32>
    %62 = vector.shape_cast %61 : vector<2x8x32xf32> to vector<16x32xf32>
    %c0_22 = arith.constant 0 : index
    %c0_23 = arith.constant 0 : index
    %c0_24 = arith.constant 0 : index
    %63 = vector.load %arg6[%c0_22, %c0_23, %c0_24] : memref<2x32x32xf32, #tpu.memory_space<vmem>>, vector<1x32x32xf32>
    %64 = vector.shape_cast %63 : vector<1x32x32xf32> to vector<32x32xf32>
    %cst_25 = arith.constant dense<0.000000e+00> : vector<16x32xf32>
    %65 = tpu.matmul %62, %64, %cst_25 {dimension_numbers = #tpu.dot_dimension_numbers<[1], [0], [0], [1], [0, 0, 1, 1], [], []>} : vector<16x32xf32>, vector<32x32xf32>, vector<16x32xf32> -> vector<16x32xf32>
    %c0_26 = arith.constant 0 : index
    %c0_27 = arith.constant 0 : index
    %c0_28 = arith.constant 0 : index
    %66 = vector.load %arg7[%c0_26, %c0_27, %c0_28] : memref<2x1x32xf32, #tpu.memory_space<vmem>>, vector<1x1x32xf32>
    %67 = vector.shape_cast %66 : vector<1x1x32xf32> to vector<1x32xf32>
    %68 = vector.broadcast %67 : vector<1x32xf32> to vector<16x32xf32>
    %69 = arith.addf %65, %68 : vector<16x32xf32>
    %70 = arith.addf %22, %69 : vector<16x32xf32>
    %c0_29 = arith.constant 0 : index
    %c0_30 = arith.constant 0 : index
    %c0_31 = arith.constant 0 : index
    %71 = vector.load %arg8[%c0_29, %c0_30, %c0_31] : memref<2x1x32xf32, #tpu.memory_space<vmem>>, vector<1x1x32xf32>
    %72 = vector.shape_cast %71 : vector<1x1x32xf32> to vector<1x32xf32>
    %c0_32 = arith.constant 0 : index
    %c0_33 = arith.constant 0 : index
    %c0_34 = arith.constant 0 : index
    %73 = vector.load %arg9[%c0_32, %c0_33, %c0_34] : memref<2x1x32xf32, #tpu.memory_space<vmem>>, vector<1x1x32xf32>
    %74 = vector.shape_cast %73 : vector<1x1x32xf32> to vector<1x32xf32>
    %cst_35 = arith.constant dense<0.000000e+00> : vector<16xf32>
    %75 = vector.multi_reduction <add>, %70, %cst_35 [1] : vector<16x32xf32> to vector<16xf32>
    %76 = vector.shape_cast %75 : vector<16xf32> to vector<16x1xf32>
    %cst_36 = arith.constant 3.200000e+01 : f32
    %77 = vector.broadcast %cst_36 : f32 to vector<16x1xf32>
    %78 = arith.divf %76, %77 : vector<16x1xf32>
    %79 = vector.broadcast %78 : vector<16x1xf32> to vector<16x32xf32>
    %80 = arith.subf %70, %79 : vector<16x32xf32>
    %81 = arith.mulf %80, %80 : vector<16x32xf32>
    %cst_37 = arith.constant dense<0.000000e+00> : vector<16xf32>
    %82 = vector.multi_reduction <add>, %81, %cst_37 [1] : vector<16x32xf32> to vector<16xf32>
    %83 = vector.shape_cast %82 : vector<16xf32> to vector<16x1xf32>
    %cst_38 = arith.constant 3.200000e+01 : f32
    %84 = vector.broadcast %cst_38 : f32 to vector<16x1xf32>
    %85 = arith.divf %83, %84 : vector<16x1xf32>
    %cst_39 = arith.constant 9.99999996E-13 : f32
    %86 = vector.broadcast %cst_39 : f32 to vector<16x1xf32>
    %87 = arith.addf %85, %86 : vector<16x1xf32>
    %88 = math.rsqrt %87 : vector<16x1xf32>
    %89 = vector.broadcast %88 : vector<16x1xf32> to vector<16x32xf32>
    %90 = arith.mulf %80, %89 : vector<16x32xf32>
    %91 = vector.broadcast %72 : vector<1x32xf32> to vector<16x32xf32>
    %92 = arith.mulf %90, %91 : vector<16x32xf32>
    %93 = vector.broadcast %74 : vector<1x32xf32> to vector<16x32xf32>
    %94 = arith.addf %92, %93 : vector<16x32xf32>
    %c0_40 = arith.constant 0 : index
    %c0_41 = arith.constant 0 : index
    %c0_42 = arith.constant 0 : index
    %95 = vector.load %arg10[%c0_40, %c0_41, %c0_42] : memref<2x32x64xf32, #tpu.memory_space<vmem>>, vector<1x32x64xf32>
    %96 = vector.shape_cast %95 : vector<1x32x64xf32> to vector<32x64xf32>
    %cst_43 = arith.constant dense<0.000000e+00> : vector<16x64xf32>
    %97 = tpu.matmul %94, %96, %cst_43 {dimension_numbers = #tpu.dot_dimension_numbers<[1], [0], [0], [1], [0, 0, 1, 1], [], []>} : vector<16x32xf32>, vector<32x64xf32>, vector<16x64xf32> -> vector<16x64xf32>
    %c0_44 = arith.constant 0 : index
    %c0_45 = arith.constant 0 : index
    %c0_46 = arith.constant 0 : index
    %98 = vector.load %arg11[%c0_44, %c0_45, %c0_46] : memref<2x1x64xf32, #tpu.memory_space<vmem>>, vector<1x1x64xf32>
    %99 = vector.shape_cast %98 : vector<1x1x64xf32> to vector<1x64xf32>
    %100 = vector.broadcast %99 : vector<1x64xf32> to vector<16x64xf32>
    %101 = arith.addf %97, %100 : vector<16x64xf32>
    %cst_47 = arith.constant 5.000000e-01 : f32
    %102 = vector.broadcast %cst_47 : f32 to vector<16x64xf32>
    %103 = arith.mulf %102, %101 : vector<16x64xf32>
    %cst_48 = arith.constant 4.471500e-02 : f32
    %104 = vector.broadcast %cst_48 : f32 to vector<16x64xf32>
    %105 = arith.mulf %104, %101 : vector<16x64xf32>
    %106 = arith.mulf %105, %101 : vector<16x64xf32>
    %107 = arith.mulf %106, %101 : vector<16x64xf32>
    %108 = arith.addf %101, %107 : vector<16x64xf32>
    %cst_49 = arith.constant 0.797884583 : f32
    %109 = vector.broadcast %cst_49 : f32 to vector<16x64xf32>
    %110 = arith.mulf %109, %108 : vector<16x64xf32>
    %111 = math.tanh %110 : vector<16x64xf32>
    %cst_50 = arith.constant 1.000000e+00 : f32
    %112 = vector.broadcast %cst_50 : f32 to vector<16x64xf32>
    %113 = arith.addf %112, %111 : vector<16x64xf32>
    %114 = arith.mulf %103, %113 : vector<16x64xf32>
    %c0_51 = arith.constant 0 : index
    %c0_52 = arith.constant 0 : index
    %c0_53 = arith.constant 0 : index
    %115 = vector.load %arg12[%c0_51, %c0_52, %c0_53] : memref<2x64x32xf32, #tpu.memory_space<vmem>>, vector<1x64x32xf32>
    %116 = vector.shape_cast %115 : vector<1x64x32xf32> to vector<64x32xf32>
    %cst_54 = arith.constant dense<0.000000e+00> : vector<16x32xf32>
    %117 = tpu.matmul %114, %116, %cst_54 {dimension_numbers = #tpu.dot_dimension_numbers<[1], [0], [0], [1], [0, 0, 1, 1], [], []>} : vector<16x64xf32>, vector<64x32xf32>, vector<16x32xf32> -> vector<16x32xf32>
    %c0_55 = arith.constant 0 : index
    %c0_56 = arith.constant 0 : index
    %c0_57 = arith.constant 0 : index
    %118 = vector.load %arg13[%c0_55, %c0_56, %c0_57] : memref<2x1x32xf32, #tpu.memory_space<vmem>>, vector<1x1x32xf32>
    %119 = vector.shape_cast %118 : vector<1x1x32xf32> to vector<1x32xf32>
    %120 = vector.broadcast %119 : vector<1x32xf32> to vector<16x32xf32>
    %121 = arith.addf %117, %120 : vector<16x32xf32>
    %122 = arith.addf %94, %121 : vector<16x32xf32>
    %c0_58 = arith.constant 0 : index
    %c0_59 = arith.constant 0 : index
    %c0_60 = arith.constant 0 : index
    %123 = vector.load %arg14[%c0_58, %c0_59, %c0_60] : memref<2x1x32xf32, #tpu.memory_space<vmem>>, vector<1x1x32xf32>
    %124 = vector.shape_cast %123 : vector<1x1x32xf32> to vector<1x32xf32>
    %c0_61 = arith.constant 0 : index
    %c0_62 = arith.constant 0 : index
    %c0_63 = arith.constant 0 : index
    %125 = vector.load %arg15[%c0_61, %c0_62, %c0_63] : memref<2x1x32xf32, #tpu.memory_space<vmem>>, vector<1x1x32xf32>
    %126 = vector.shape_cast %125 : vector<1x1x32xf32> to vector<1x32xf32>
    %cst_64 = arith.constant dense<0.000000e+00> : vector<16xf32>
    %127 = vector.multi_reduction <add>, %122, %cst_64 [1] : vector<16x32xf32> to vector<16xf32>
    %128 = vector.shape_cast %127 : vector<16xf32> to vector<16x1xf32>
    %cst_65 = arith.constant 3.200000e+01 : f32
    %129 = vector.broadcast %cst_65 : f32 to vector<16x1xf32>
    %130 = arith.divf %128, %129 : vector<16x1xf32>
    %131 = vector.broadcast %130 : vector<16x1xf32> to vector<16x32xf32>
    %132 = arith.subf %122, %131 : vector<16x32xf32>
    %133 = arith.mulf %132, %132 : vector<16x32xf32>
    %cst_66 = arith.constant dense<0.000000e+00> : vector<16xf32>
    %134 = vector.multi_reduction <add>, %133, %cst_66 [1] : vector<16x32xf32> to vector<16xf32>
    %135 = vector.shape_cast %134 : vector<16xf32> to vector<16x1xf32>
    %cst_67 = arith.constant 3.200000e+01 : f32
    %136 = vector.broadcast %cst_67 : f32 to vector<16x1xf32>
    %137 = arith.divf %135, %136 : vector<16x1xf32>
    %cst_68 = arith.constant 9.99999996E-13 : f32
    %138 = vector.broadcast %cst_68 : f32 to vector<16x1xf32>
    %139 = arith.addf %137, %138 : vector<16x1xf32>
    %140 = math.rsqrt %139 : vector<16x1xf32>
    %141 = vector.broadcast %140 : vector<16x1xf32> to vector<16x32xf32>
    %142 = arith.mulf %132, %141 : vector<16x32xf32>
    %143 = vector.broadcast %124 : vector<1x32xf32> to vector<16x32xf32>
    %144 = arith.mulf %142, %143 : vector<16x32xf32>
    %145 = vector.broadcast %126 : vector<1x32xf32> to vector<16x32xf32>
    %146 = arith.addf %144, %145 : vector<16x32xf32>
    %c1 = arith.constant 1 : index
    %c0_69 = arith.constant 0 : index
    %c0_70 = arith.constant 0 : index
    %147 = vector.load %arg4[%c1, %c0_69, %c0_70] : memref<2x32x96xf32, #tpu.memory_space<vmem>>, vector<1x32x96xf32>
    %148 = vector.shape_cast %147 : vector<1x32x96xf32> to vector<32x96xf32>
    %cst_71 = arith.constant dense<0.000000e+00> : vector<16x96xf32>
    %149 = tpu.matmul %146, %148, %cst_71 {dimension_numbers = #tpu.dot_dimension_numbers<[1], [0], [0], [1], [0, 0, 1, 1], [], []>} : vector<16x32xf32>, vector<32x96xf32>, vector<16x96xf32> -> vector<16x96xf32>
    %c1_72 = arith.constant 1 : index
    %c0_73 = arith.constant 0 : index
    %c0_74 = arith.constant 0 : index
    %150 = vector.load %arg5[%c1_72, %c0_73, %c0_74] : memref<2x1x96xf32, #tpu.memory_space<vmem>>, vector<1x1x96xf32>
    %151 = vector.shape_cast %150 : vector<1x1x96xf32> to vector<1x96xf32>
    %152 = vector.broadcast %151 : vector<1x96xf32> to vector<16x96xf32>
    %153 = arith.addf %149, %152 : vector<16x96xf32>
    %154 = vector.extract_strided_slice %153 {offsets = [0, 0], sizes = [16, 24], strides = [1, 1]} : vector<16x96xf32> to vector<16x24xf32>
    %155 = vector.shape_cast %154 : vector<16x24xf32> to vector<2x8x24xf32>
    %156 = vector.extract_strided_slice %153 {offsets = [0, 24], sizes = [16, 24], strides = [1, 1]} : vector<16x96xf32> to vector<16x24xf32>
    %157 = vector.shape_cast %156 : vector<16x24xf32> to vector<2x8x24xf32>
    %158 = vector.extract_strided_slice %153 {offsets = [0, 48], sizes = [16, 24], strides = [1, 1]} : vector<16x96xf32> to vector<16x24xf32>
    %159 = vector.shape_cast %158 : vector<16x24xf32> to vector<2x8x24xf32>
    %160 = vector.extract_strided_slice %153 {offsets = [0, 72], sizes = [16, 24], strides = [1, 1]} : vector<16x96xf32> to vector<16x24xf32>
    %161 = vector.shape_cast %160 : vector<16x24xf32> to vector<2x8x24xf32>
    %162 = tpu.concatenate %155, %157, %159, %161 in 0 : vector<2x8x24xf32>, vector<2x8x24xf32>, vector<2x8x24xf32>, vector<2x8x24xf32> -> vector<8x8x24xf32>
    %163 = vector.extract_strided_slice %162 {offsets = [0, 0, 0], sizes = [8, 8, 8], strides = [1, 1, 1]} : vector<8x8x24xf32> to vector<8x8x8xf32>
    %164 = vector.extract_strided_slice %162 {offsets = [0, 0, 8], sizes = [8, 8, 8], strides = [1, 1, 1]} : vector<8x8x24xf32> to vector<8x8x8xf32>
    %165 = vector.extract_strided_slice %162 {offsets = [0, 0, 16], sizes = [8, 8, 8], strides = [1, 1, 1]} : vector<8x8x24xf32> to vector<8x8x8xf32>
    "tpu.trace_start"() <{level = 10 : i32, message = "nqd,nkd->nqk"}> : () -> ()
    %cst_75 = arith.constant dense<0.000000e+00> : vector<8x8x8xf32>
    %166 = tpu.matmul %163, %164, %cst_75 {dimension_numbers = #tpu.dot_dimension_numbers<[2], [2], [1], [1], [0, 0, 0, 1, 1, 1], [0], [0]>} : vector<8x8x8xf32>, vector<8x8x8xf32>, vector<8x8x8xf32> -> vector<8x8x8xf32>
    "tpu.trace_stop"() : () -> ()
    %167 = vector.broadcast %24 : vector<8x1x8xf32> to vector<8x8x8xf32>
    %168 = arith.addf %166, %167 : vector<8x8x8xf32>
    %cst_76 = arith.constant dense<0xFF800000> : vector<8x8xf32>
    %169 = vector.multi_reduction <maximumf>, %168, %cst_76 [2] : vector<8x8x8xf32> to vector<8x8xf32>
    %170 = vector.shape_cast %169 : vector<8x8xf32> to vector<8x8x1xf32>
    %171 = vector.broadcast %170 : vector<8x8x1xf32> to vector<8x8x8xf32>
    %172 = arith.subf %168, %171 : vector<8x8x8xf32>
    %173 = math.exp %172 : vector<8x8x8xf32>
    %cst_77 = arith.constant dense<0.000000e+00> : vector<8x8xf32>
    %174 = vector.multi_reduction <add>, %173, %cst_77 [2] : vector<8x8x8xf32> to vector<8x8xf32>
    %175 = vector.shape_cast %174 : vector<8x8xf32> to vector<8x8x1xf32>
    %176 = vector.broadcast %175 : vector<8x8x1xf32> to vector<8x8x8xf32>
    %177 = arith.divf %173, %176 : vector<8x8x8xf32>
    "tpu.trace_start"() <{level = 10 : i32, message = "nqk,nkd->nqd"}> : () -> ()
    %cst_78 = arith.constant dense<0.000000e+00> : vector<8x8x8xf32>
    %178 = tpu.matmul %177, %165, %cst_78 {dimension_numbers = #tpu.dot_dimension_numbers<[2], [1], [1], [2], [0, 0, 0, 1, 1, 2], [0], [0]>} : vector<8x8x8xf32>, vector<8x8x8xf32>, vector<8x8x8xf32> -> vector<8x8x8xf32>
    "tpu.trace_stop"() : () -> ()
    %179 = vector.extract_strided_slice %178 {offsets = [0, 0, 0], sizes = [2, 8, 8], strides = [1, 1, 1]} : vector<8x8x8xf32> to vector<2x8x8xf32>
    %180 = vector.extract_strided_slice %178 {offsets = [2, 0, 0], sizes = [2, 8, 8], strides = [1, 1, 1]} : vector<8x8x8xf32> to vector<2x8x8xf32>
    %181 = vector.extract_strided_slice %178 {offsets = [4, 0, 0], sizes = [2, 8, 8], strides = [1, 1, 1]} : vector<8x8x8xf32> to vector<2x8x8xf32>
    %182 = vector.extract_strided_slice %178 {offsets = [6, 0, 0], sizes = [2, 8, 8], strides = [1, 1, 1]} : vector<8x8x8xf32> to vector<2x8x8xf32>
    %183 = tpu.concatenate %179, %180, %181, %182 in 2 : vector<2x8x8xf32>, vector<2x8x8xf32>, vector<2x8x8xf32>, vector<2x8x8xf32> -> vector<2x8x32xf32>
    %184 = vector.shape_cast %183 : vector<2x8x32xf32> to vector<16x32xf32>
    %c1_79 = arith.constant 1 : index
    %c0_80 = arith.constant 0 : index
    %c0_81 = arith.constant 0 : index
    %185 = vector.load %arg6[%c1_79, %c0_80, %c0_81] : memref<2x32x32xf32, #tpu.memory_space<vmem>>, vector<1x32x32xf32>
    %186 = vector.shape_cast %185 : vector<1x32x32xf32> to vector<32x32xf32>
    %cst_82 = arith.constant dense<0.000000e+00> : vector<16x32xf32>
    %187 = tpu.matmul %184, %186, %cst_82 {dimension_numbers = #tpu.dot_dimension_numbers<[1], [0], [0], [1], [0, 0, 1, 1], [], []>} : vector<16x32xf32>, vector<32x32xf32>, vector<16x32xf32> -> vector<16x32xf32>
    %c1_83 = arith.constant 1 : index
    %c0_84 = arith.constant 0 : index
    %c0_85 = arith.constant 0 : index
    %188 = vector.load %arg7[%c1_83, %c0_84, %c0_85] : memref<2x1x32xf32, #tpu.memory_space<vmem>>, vector<1x1x32xf32>
    %189 = vector.shape_cast %188 : vector<1x1x32xf32> to vector<1x32xf32>
    %190 = vector.broadcast %189 : vector<1x32xf32> to vector<16x32xf32>
    %191 = arith.addf %187, %190 : vector<16x32xf32>
    %192 = arith.addf %146, %191 : vector<16x32xf32>
    %c1_86 = arith.constant 1 : index
    %c0_87 = arith.constant 0 : index
    %c0_88 = arith.constant 0 : index
    %193 = vector.load %arg8[%c1_86, %c0_87, %c0_88] : memref<2x1x32xf32, #tpu.memory_space<vmem>>, vector<1x1x32xf32>
    %194 = vector.shape_cast %193 : vector<1x1x32xf32> to vector<1x32xf32>
    %c1_89 = arith.constant 1 : index
    %c0_90 = arith.constant 0 : index
    %c0_91 = arith.constant 0 : index
    %195 = vector.load %arg9[%c1_89, %c0_90, %c0_91] : memref<2x1x32xf32, #tpu.memory_space<vmem>>, vector<1x1x32xf32>
    %196 = vector.shape_cast %195 : vector<1x1x32xf32> to vector<1x32xf32>
    %cst_92 = arith.constant dense<0.000000e+00> : vector<16xf32>
    %197 = vector.multi_reduction <add>, %192, %cst_92 [1] : vector<16x32xf32> to vector<16xf32>
    %198 = vector.shape_cast %197 : vector<16xf32> to vector<16x1xf32>
    %cst_93 = arith.constant 3.200000e+01 : f32
    %199 = vector.broadcast %cst_93 : f32 to vector<16x1xf32>
    %200 = arith.divf %198, %199 : vector<16x1xf32>
    %201 = vector.broadcast %200 : vector<16x1xf32> to vector<16x32xf32>
    %202 = arith.subf %192, %201 : vector<16x32xf32>
    %203 = arith.mulf %202, %202 : vector<16x32xf32>
    %cst_94 = arith.constant dense<0.000000e+00> : vector<16xf32>
    %204 = vector.multi_reduction <add>, %203, %cst_94 [1] : vector<16x32xf32> to vector<16xf32>
    %205 = vector.shape_cast %204 : vector<16xf32> to vector<16x1xf32>
    %cst_95 = arith.constant 3.200000e+01 : f32
    %206 = vector.broadcast %cst_95 : f32 to vector<16x1xf32>
    %207 = arith.divf %205, %206 : vector<16x1xf32>
    %cst_96 = arith.constant 9.99999996E-13 : f32
    %208 = vector.broadcast %cst_96 : f32 to vector<16x1xf32>
    %209 = arith.addf %207, %208 : vector<16x1xf32>
    %210 = math.rsqrt %209 : vector<16x1xf32>
    %211 = vector.broadcast %210 : vector<16x1xf32> to vector<16x32xf32>
    %212 = arith.mulf %202, %211 : vector<16x32xf32>
    %213 = vector.broadcast %194 : vector<1x32xf32> to vector<16x32xf32>
    %214 = arith.mulf %212, %213 : vector<16x32xf32>
    %215 = vector.broadcast %196 : vector<1x32xf32> to vector<16x32xf32>
    %216 = arith.addf %214, %215 : vector<16x32xf32>
    %c1_97 = arith.constant 1 : index
    %c0_98 = arith.constant 0 : index
    %c0_99 = arith.constant 0 : index
    %217 = vector.load %arg10[%c1_97, %c0_98, %c0_99] : memref<2x32x64xf32, #tpu.memory_space<vmem>>, vector<1x32x64xf32>
    %218 = vector.shape_cast %217 : vector<1x32x64xf32> to vector<32x64xf32>
    %cst_100 = arith.constant dense<0.000000e+00> : vector<16x64xf32>
    %219 = tpu.matmul %216, %218, %cst_100 {dimension_numbers = #tpu.dot_dimension_numbers<[1], [0], [0], [1], [0, 0, 1, 1], [], []>} : vector<16x32xf32>, vector<32x64xf32>, vector<16x64xf32> -> vector<16x64xf32>
    %c1_101 = arith.constant 1 : index
    %c0_102 = arith.constant 0 : index
    %c0_103 = arith.constant 0 : index
    %220 = vector.load %arg11[%c1_101, %c0_102, %c0_103] : memref<2x1x64xf32, #tpu.memory_space<vmem>>, vector<1x1x64xf32>
    %221 = vector.shape_cast %220 : vector<1x1x64xf32> to vector<1x64xf32>
    %222 = vector.broadcast %221 : vector<1x64xf32> to vector<16x64xf32>
    %223 = arith.addf %219, %222 : vector<16x64xf32>
    %cst_104 = arith.constant 5.000000e-01 : f32
    %224 = vector.broadcast %cst_104 : f32 to vector<16x64xf32>
    %225 = arith.mulf %224, %223 : vector<16x64xf32>
    %cst_105 = arith.constant 4.471500e-02 : f32
    %226 = vector.broadcast %cst_105 : f32 to vector<16x64xf32>
    %227 = arith.mulf %226, %223 : vector<16x64xf32>
    %228 = arith.mulf %227, %223 : vector<16x64xf32>
    %229 = arith.mulf %228, %223 : vector<16x64xf32>
    %230 = arith.addf %223, %229 : vector<16x64xf32>
    %cst_106 = arith.constant 0.797884583 : f32
    %231 = vector.broadcast %cst_106 : f32 to vector<16x64xf32>
    %232 = arith.mulf %231, %230 : vector<16x64xf32>
    %233 = math.tanh %232 : vector<16x64xf32>
    %cst_107 = arith.constant 1.000000e+00 : f32
    %234 = vector.broadcast %cst_107 : f32 to vector<16x64xf32>
    %235 = arith.addf %234, %233 : vector<16x64xf32>
    %236 = arith.mulf %225, %235 : vector<16x64xf32>
    %c1_108 = arith.constant 1 : index
    %c0_109 = arith.constant 0 : index
    %c0_110 = arith.constant 0 : index
    %237 = vector.load %arg12[%c1_108, %c0_109, %c0_110] : memref<2x64x32xf32, #tpu.memory_space<vmem>>, vector<1x64x32xf32>
    %238 = vector.shape_cast %237 : vector<1x64x32xf32> to vector<64x32xf32>
    %cst_111 = arith.constant dense<0.000000e+00> : vector<16x32xf32>
    %239 = tpu.matmul %236, %238, %cst_111 {dimension_numbers = #tpu.dot_dimension_numbers<[1], [0], [0], [1], [0, 0, 1, 1], [], []>} : vector<16x64xf32>, vector<64x32xf32>, vector<16x32xf32> -> vector<16x32xf32>
    %c1_112 = arith.constant 1 : index
    %c0_113 = arith.constant 0 : index
    %c0_114 = arith.constant 0 : index
    %240 = vector.load %arg13[%c1_112, %c0_113, %c0_114] : memref<2x1x32xf32, #tpu.memory_space<vmem>>, vector<1x1x32xf32>
    %241 = vector.shape_cast %240 : vector<1x1x32xf32> to vector<1x32xf32>
    %242 = vector.broadcast %241 : vector<1x32xf32> to vector<16x32xf32>
    %243 = arith.addf %239, %242 : vector<16x32xf32>
    %244 = arith.addf %216, %243 : vector<16x32xf32>
    %c1_115 = arith.constant 1 : index
    %c0_116 = arith.constant 0 : index
    %c0_117 = arith.constant 0 : index
    %245 = vector.load %arg14[%c1_115, %c0_116, %c0_117] : memref<2x1x32xf32, #tpu.memory_space<vmem>>, vector<1x1x32xf32>
    %246 = vector.shape_cast %245 : vector<1x1x32xf32> to vector<1x32xf32>
    %c1_118 = arith.constant 1 : index
    %c0_119 = arith.constant 0 : index
    %c0_120 = arith.constant 0 : index
    %247 = vector.load %arg15[%c1_118, %c0_119, %c0_120] : memref<2x1x32xf32, #tpu.memory_space<vmem>>, vector<1x1x32xf32>
    %248 = vector.shape_cast %247 : vector<1x1x32xf32> to vector<1x32xf32>
    %cst_121 = arith.constant dense<0.000000e+00> : vector<16xf32>
    %249 = vector.multi_reduction <add>, %244, %cst_121 [1] : vector<16x32xf32> to vector<16xf32>
    %250 = vector.shape_cast %249 : vector<16xf32> to vector<16x1xf32>
    %cst_122 = arith.constant 3.200000e+01 : f32
    %251 = vector.broadcast %cst_122 : f32 to vector<16x1xf32>
    %252 = arith.divf %250, %251 : vector<16x1xf32>
    %253 = vector.broadcast %252 : vector<16x1xf32> to vector<16x32xf32>
    %254 = arith.subf %244, %253 : vector<16x32xf32>
    %255 = arith.mulf %254, %254 : vector<16x32xf32>
    %cst_123 = arith.constant dense<0.000000e+00> : vector<16xf32>
    %256 = vector.multi_reduction <add>, %255, %cst_123 [1] : vector<16x32xf32> to vector<16xf32>
    %257 = vector.shape_cast %256 : vector<16xf32> to vector<16x1xf32>
    %cst_124 = arith.constant 3.200000e+01 : f32
    %258 = vector.broadcast %cst_124 : f32 to vector<16x1xf32>
    %259 = arith.divf %257, %258 : vector<16x1xf32>
    %cst_125 = arith.constant 9.99999996E-13 : f32
    %260 = vector.broadcast %cst_125 : f32 to vector<16x1xf32>
    %261 = arith.addf %259, %260 : vector<16x1xf32>
    %262 = math.rsqrt %261 : vector<16x1xf32>
    %263 = vector.broadcast %262 : vector<16x1xf32> to vector<16x32xf32>
    %264 = arith.mulf %254, %263 : vector<16x32xf32>
    %265 = vector.broadcast %246 : vector<1x32xf32> to vector<16x32xf32>
    %266 = arith.mulf %264, %265 : vector<16x32xf32>
    %267 = vector.broadcast %248 : vector<1x32xf32> to vector<16x32xf32>
    %268 = arith.addf %266, %267 : vector<16x32xf32>
    %269 = vector.shape_cast %268 : vector<16x32xf32> to vector<2x8x32xf32>
    %270 = vector.extract_strided_slice %269 {offsets = [0, 0, 0], sizes = [2, 1, 32], strides = [1, 1, 1]} : vector<2x8x32xf32> to vector<2x1x32xf32>
    %271 = vector.shape_cast %270 : vector<2x1x32xf32> to vector<2x32xf32>
    %c0_126 = arith.constant 0 : index
    %c0_127 = arith.constant 0 : index
    %272 = vector.load %arg16[%c0_126, %c0_127] : memref<32x32xf32, #tpu.memory_space<vmem>>, vector<32x32xf32>
    %cst_128 = arith.constant dense<0.000000e+00> : vector<2x32xf32>
    %273 = tpu.matmul %271, %272, %cst_128 {dimension_numbers = #tpu.dot_dimension_numbers<[1], [0], [0], [1], [0, 0, 1, 1], [], []>} : vector<2x32xf32>, vector<32x32xf32>, vector<2x32xf32> -> vector<2x32xf32>
    %c0_129 = arith.constant 0 : index
    %c0_130 = arith.constant 0 : index
    %274 = vector.load %arg17[%c0_129, %c0_130] : memref<1x32xf32, #tpu.memory_space<vmem>>, vector<1x32xf32>
    %275 = vector.broadcast %274 : vector<1x32xf32> to vector<2x32xf32>
    %276 = arith.addf %273, %275 : vector<2x32xf32>
    %277 = math.tanh %276 : vector<2x32xf32>
    %c0_131 = arith.constant 0 : index
    %c0_132 = arith.constant 0 : index
    %278 = vector.load %arg18[%c0_131, %c0_132] : memref<32x128xf32, #tpu.memory_space<vmem>>, vector<32x128xf32>
    %cst_133 = arith.constant dense<0.000000e+00> : vector<2x128xf32>
    %279 = tpu.matmul %277, %278, %cst_133 {dimension_numbers = #tpu.dot_dimension_numbers<[1], [0], [0], [1], [0, 0, 1, 1], [], []>} : vector<2x32xf32>, vector<32x128xf32>, vector<2x128xf32> -> vector<2x128xf32>
    %c0_134 = arith.constant 0 : index
    %c0_135 = arith.constant 0 : index
    %280 = vector.load %arg19[%c0_134, %c0_135] : memref<1x128xf32, #tpu.memory_space<vmem>>, vector<1x128xf32>
    %281 = vector.broadcast %280 : vector<1x128xf32> to vector<2x128xf32>
    %282 = arith.addf %279, %281 : vector<2x128xf32>
    %c0_136 = arith.constant 0 : index
    %c0_137 = arith.constant 0 : index
    %283 = vector.load %arg20[%c0_136, %c0_137] : memref<2x128xf32, #tpu.memory_space<vmem>>, vector<2x128xf32>
    tpu.vector_store %arg20[%c0_136, %c0_137], %282 {strides = array<i32>} : memref<2x128xf32, #tpu.memory_space<vmem>>, vector<2x128xf32>,
    return
  }
}

</mosaic_0001>

<bundles_post_ra>
// kernel: cross_encoder_forward.1
= control target key start
LH: loop header
LB: loop body
LE: loop exit
PB: predicated region body
PF: predicated region fallthrough
CT: control target
= control target key end

     0   :  { %vm69_vm0 = vcmask 261120   ;;  %v2369_v4 = vmov 32.0   ;;  %s2370_s28 = smov 104   ;;  %s2372_s29 = smov 56   ;;  %vm209_vm8 = vcmask 64512   ;;  %s3194_s0 = inlined_call_operand.vmem [shape: f32[16,32], index: 0, kind: input, shape index: {}]   ;;  %s3195_s2 = inlined_call_operand.vmem [shape: f32[1,32], index: 2, kind: input, shape index: {}]   ;;  %s3196_s3 = inlined_call_operand.vmem [shape: f32[1,32], index: 3, kind: input, shape index: {}]   ;;  %s3197_s5 = inlined_call_operand.vmem [shape: f32[2,1,96], index: 5, kind: input, shape index: {}]   ;;  %s3198_s4 = inlined_call_operand.vmem [shape: f32[2,32,96], index: 4, kind: input, shape index: {}]   ;;  %s3199_s1 = inlined_call_operand.vmem [shape: f32[8,8], index: 1, kind: input, shape index: {}]   ;;  %s3200_s7 = inlined_call_operand.vmem [shape: f32[2,1,32], index: 7, kind: input, shape index: {}]   ;;  %s3201_s6 = inlined_call_operand.vmem [shape: f32[2,32,32], index: 6, kind: input, shape index: {}]   ;;  %s3202_s8 = inlined_call_operand.vmem [shape: f32[2,1,32], index: 8, kind: input, shape index: {}]   ;;  %s3203_s9 = inlined_call_operand.vmem [shape: f32[2,1,32], index: 9, kind: input, shape index: {}]   ;;  %s3204_s11 = inlined_call_operand.vmem [shape: f32[2,1,64], index: 11, kind: input, shape index: {}]   ;;  %s3205_s10 = inlined_call_operand.vmem [shape: f32[2,32,64], index: 10, kind: input, shape index: {}]   ;;  %s3206_s13 = inlined_call_operand.vmem [shape: f32[2,1,32], index: 13, kind: input, shape index: {}]   ;;  %s3207_s12 = inlined_call_operand.vmem [shape: f32[2,64,32], index: 12, kind: input, shape index: {}]   ;;  %s3208_s14 = inlined_call_operand.vmem [shape: f32[2,1,32], index: 14, kind: input, shape index: {}]   ;;  %s3209_s15 = inlined_call_operand.vmem [shape: f32[2,1,32], index: 15, kind: input, shape index: {}]   ;;  %s3210_s17 = inlined_call_operand.vmem [shape: f32[1,32], index: 17, kind: input, shape index: {}]   ;;  %s3211_s16 = inlined_call_operand.vmem [shape: f32[32,32], index: 16, kind: input, shape index: {}]   ;;  %s3212_s19 = inlined_call_operand.vmem [shape: f32[1,128], index: 19, kind: input, shape index: {}]   ;;  %s3213_s18 = inlined_call_operand.vmem [shape: f32[32,128], index: 18, kind: input, shape index: {}]   ;;  %s3214_s20 = inlined_call_operand.vmem [shape: f32[2,128], index: 20, kind: output, shape index: {}]  }
   0x1   :  { %3226 = sst [smem:[#allocation2_spill]] %s3194_s0  ;;  %2273 = vrcp.f32 %v2369_v4  ;;  %s2373_s30 = smov 120  }
   0x2   :  { %3227 = sst [smem:[#allocation3_spill]] %s3195_s2  ;;  %s3222_s2 = smov 16  }
   0x3   :  { %3228 = sst [smem:[#allocation4_spill]] %s3196_s3 }
   0x4   :  { %3229 = sst [smem:[#allocation5_spill]] %s3197_s5 }
   0x5   :  { %3230 = sst [smem:[#allocation6_spill]] %s3198_s4  ;;  %s2371_s4 = smov 80  }
   0x6   :  { %s3231_s23 = sld [smem:[#allocation2_spill]] }
   0x7   :  { %v2274_v5 = vpop.eup %2273  ;;  %s3232_s26 = sld [smem:[#allocation6_spill]] }
   0x8   :  { %v77_v6 = vmul.f32 32.0, %v2274_v5  ;;  %vm81_vm1 = vweird.f32 %v2274_v5  ;;  %s3233_s22 = sld [smem:[#allocation3_spill]] }
   0x9   :  { %s3234_s3 = sld [smem:[#allocation4_spill]] }
   0xa   :  { %v78_v7 = vsub.f32 1.0, %v77_v6  ;;  %s3235_s27 = sld [smem:[#allocation5_spill]] }
   0xc   :  { %v65_v0 = vld [vmem:[%s3231_s23] sm:$0xff]  ;;  %v66_v2 = vld [vmem:[%s3231_s23 + $0x8] sm:$0xff]  ;;  %v79_v8 = vmul.f32 %v2274_v5, %v78_v7  ;;  %s3224_s23 = smov 24  }
   0xd   :  { %v70_v1 = vsel %vm69_vm0, %v65_v0, 0.0  ;;  %v73_v3 = vsel %vm69_vm0, %v66_v2, 0.0  ;;  %v143_v21 = vld [vmem:[%s3232_s26 + $0x18] sm:$0xff]  ;;  %v142_v22 = vld [vmem:[%s3232_s26 + $0x10] sm:$0xff]  ;;  %v141_v23 = vld [vmem:[%s3232_s26 + $0x8] sm:$0xff] }
   0xe   :  { %71 = vadd.xlane.f32.xlu0 %v70_v1  ;;  %v80_v9 = vadd.f32 %v2274_v5, %v79_v8  ;;  %166 = vmatpush.msra.mxu0 %v143_v21  ;;  %v140_v24 = vld [vmem:[%s3232_s26] sm:$0xff] }
   0xf   :  { %v2253_v39 = vld [vmem:[%s3233_s22] ss:$0 sm:$0xff]  ;;  %s3218_s22 = smov 8  }
  0x10   :  { %v2491_v10 = vsel %vm81_vm1, %v2274_v5, %v80_v9  ;;  %167 = vmatpush.msra.mxu0 %v142_v22  ;;  %v2254_v43 = vld [vmem:[%s3234_s3] ss:$0 sm:$0xff] }
  0x11   :  { %v2255_v53 = vld [vmem:[%s3235_s27] ss:$0 sm:$0xff] }
  0x12   :  { %168 = vmatpush.msra.mxu0 %v141_v23  ;;  %v2593_v7 = vld [vmem:[%s3199_s1] sm:$0xff]  ;;  %s3220_s1 = smov 112  }
  0x13   :  { %v191_v9 = vperm.slane %v2593_v7, 0  ;;  %v133_v21 = vrot.slane %v2593_v7, 1 }
  0x14   :  { %169 = vmatpush.msra.mxu0 %v140_v24 }
  0x15   :  { %v2615_v24 = vperm.slane %v133_v21, 0 }
  0x16   :  { %74 = vadd.xlane.f32.xlu0 %v73_v3 }
  0x81   :  { %v72_v11 = vpop.xlane.xlu0 %71 }
  0x82   :  { %v83_v12 = vmul.f32 %v2491_v10, %v72_v11 }
  0x84   :  { %v85_v13 = vsub.f32 %v65_v0, %v83_v12 }
  0x86   :  { %v87_v14 = vmul.f32 %v85_v13, %v85_v13 }
  0x88   :  { %v89_v15 = vsel %vm69_vm0, %v87_v14, 0.0  ;;  %v136_v14 = vrot.slane %v2593_v7, 4 }
  0x89   :  { %90 = vadd.xlane.f32.xlu1 %v89_v15  ;;  %v75_v16 = vpop.xlane.xlu0 %74 }
  0x8a   :  { %v84_v17 = vmul.f32 %v2491_v10, %v75_v16  ;;  %v2606_v15 = vperm.slane %v136_v14, 0 }
  0x8c   :  { %v86_v18 = vsub.f32 %v66_v2, %v84_v17 }
  0x8e   :  { %v88_v19 = vmul.f32 %v86_v18, %v86_v18 }
  0x90   :  { %v92_v20 = vsel %vm69_vm0, %v88_v19, 0.0  ;;  %v134_v19 = vrot.slane %v2593_v7, 2 }
  0x91   :  { %93 = vadd.xlane.f32.xlu1 %v92_v20 }
  0x92   :  { %v2611_v20 = vperm.slane %v134_v19, 0 }
  0xfc   :  { %v91_v25 = vpop.xlane.xlu1 %90 }
  0xfd   :  { %v95_v26 = vmul.f32 %v91_v25, %v2491_v10 }
  0xff   :  { %v97_v27 = vadd.f32 1e-12, %v95_v26 }
 0x101   :  { %2275 = vrsqrt.f32 %v97_v27  ;;  %vm105_vm3 = vweird.f32 %v97_v27 }
 0x104   :  { %v94_v28 = vpop.xlane.xlu1 %93 }
 0x105   :  { %v96_v29 = vmul.f32 %v94_v28, %v2491_v10 }
 0x107   :  { %v2276_v30 = vpop.eup %2275  ;;  %v98_v31 = vadd.f32 1e-12, %v96_v29  ;;  %v135_v29 = vrot.slane %v2593_v7, 3 }
 0x108   :  { %v100_v32 = vmul.f32 %v2276_v30, %v97_v27  ;;  %vm106_vm2 = vweird.f32 %v2276_v30 }
 0x109   :  { %2277 = vrsqrt.f32 %v98_v31  ;;  %vm107_vm4 = vmor %vm105_vm3, %vm106_vm2  ;;  %vm115_vm6 = vweird.f32 %v98_v31 }
 0x10a   :  { %v101_v33 = vmul.f32 %v2276_v30, %v100_v32 }
 0x10c   :  { %v102_v34 = vmul.f32 0.5, %v101_v33 }
 0x10e   :  { %v103_v35 = vsub.f32 1.5, %v102_v34 }
 0x10f   :  { %v2278_v36 = vpop.eup %2277 }
 0x110   :  { %v104_v37 = vmul.f32 %v2276_v30, %v103_v35  ;;  %v110_v38 = vmul.f32 %v2278_v36, %v98_v31  ;;  %vm116_vm5 = vweird.f32 %v2278_v36  ;;  %v139_v31 = vrot.slane %v2593_v7, 7 }
 0x111   :  { %vm117_vm7 = vmor %vm115_vm6, %vm116_vm5 }
 0x112   :  { %v108_v40 = vsel %vm107_vm4, %v2276_v30, %v104_v37  ;;  %v111_v41 = vmul.f32 %v2278_v36, %v110_v38  ;;  %v2621_v30 = vperm.slane %v135_v29, 0 }
 0x113   :  { %v119_v42 = vmul.f32 %v108_v40, %v85_v13  ;;  %v137_v40 = vrot.slane %v2593_v7, 5 }
 0x114   :  { %v112_v44 = vmul.f32 0.5, %v111_v41 }
 0x115   :  { %v124_v45 = vmul.f32 %v2253_v39, %v119_v42  ;;  %v2630_v42 = vperm.slane %v137_v40, 0 }
 0x116   :  { %v113_v46 = vsub.f32 1.5, %v112_v44 }
 0x117   :  { %v2517_v47 = vadd.f32 %v2254_v43, %v124_v45 }
 0x118   :  { %v114_v48 = vmul.f32 %v2278_v36, %v113_v46 }
 0x119   :  { %2120 = vmatmul.msk.f32.vlgmr.msra.gmra.mxu0 %vm69_vm0, %v2517_v47 }
 0x11a   :  { %v118_v49 = vsel %vm117_vm7, %v2278_v36, %v114_v48  ;;  %v2626_v36 = vperm.slane %v139_v31, 0 }
 0x11b   :  { %v120_v50 = vmul.f32 %v118_v49, %v86_v18 }
 0x11d   :  { %v125_v51 = vmul.f32 %v2253_v39, %v120_v50 }
 0x11f   :  { %v2521_v52 = vadd.f32 %v2254_v43, %v125_v51  ;;  %v138_v43 = vrot.slane %v2593_v7, 6 }
 0x121   :  { %2121 = vmatmul.msk.f32.gmra.mxu0 %vm69_vm0, %v2521_v52  ;;  %v2637_v49 = vperm.slane %v138_v43, 0 }
 0x196   :  { %v171_v54 = vpop.f32.mrf.mxu0 }
 0x197   :  { %v2528_v55 = vadd.f32 %v2255_v53, %v171_v54 }
 0x199   :  { %179 = vrot.lane.b32.xlu2 %v2528_v55, %s2370_s28 }
 0x19e   :  { %v174_v56 = vpop.f32.mrf.mxu0 }
 0x19f   :  { %v2532_v57 = vadd.f32 %v2255_v53, %v174_v56 }
 0x1a1   :  { %183 = vrot.lane.b32.xlu2 %v2528_v55, %s2371_s4  ;;  %189 = vrot.lane.b32.xlu1 %v2532_v57, %s2372_s29 }
 0x1a2   :  { %181 = vrot.lane.b32.xlu0 %v2532_v57, %s2370_s28 }
 0x1a9   :  { %187 = vrot.lane.b32.xlu2 %v2528_v55, %s2372_s29 }
 0x1b1   :  { %185 = vrot.lane.b32.xlu2 %v2532_v57, %s2371_s4 }
 0x1b9   :  { %207 = vrot.lane.b32.xlu2 %v2528_v55, %s2373_s30 }
 0x1f3   :  { %v2546_v58 = vpop.permute.xlu2 %179 }
 0x1f4   :  { %260 = vrot.lane.b32.xlu0 %v2546_v58, %s2373_s30 }
 0x1fb   :  { %v2550_v59 = vpop.permute.xlu2 %183 }
 0x1fc   :  { %312 = vrot.lane.b32.xlu2 %v2550_v59, %s2373_s30 }
 0x203   :  { %v2554_v60 = vpop.permute.xlu2 %187 }
 0x204   :  { %234 = vrot.lane.b32.xlu2 %v2532_v57, %s2373_s30 }
 0x20b   :  { %v2558_v61 = vpop.permute.xlu2 %185 }
 0x213   :  { %v208_v62 = vpop.permute.xlu2 %207  ;;  %v2560_v63 = vpop.permute.xlu1 %189 }
 0x214   :  { %v2562_v0 = vpop.permute.xlu0 %181  ;;  %2122 = vmatpush.xpose.msk.msra.mxu1 %vm209_vm8, %v208_v62  ;;  %390 = vrot.lane.b32.xlu0 %v2560_v63, %s2373_s30  ;;  %v2223_v62 = vpack.i.bf16 %v2546_v58, %v2528_v55 }
 0x215   :  { %286 = vrot.lane.b32.xlu1 %v2562_v0, %s2373_s30 }
 0x217   :  { %2123 = vmatmul.msk.f32.vlgmr.msra.gmra.mxu1 %vm209_vm8, %v2528_v55 }
 0x21c   :  { %338 = vrot.lane.b32.xlu0 %v2558_v61, %s2373_s30 }
 0x21d   :  { %364 = vrot.lane.b32.xlu1 %v2554_v60, %s2373_s30 }
 0x256   :  { %v313_v1 = vpop.permute.xlu2 %312 }
 0x257   :  { %2130 = vmatpush.xpose.msk.msra.mxu2 %vm209_vm8, %v313_v1  ;;  %v2228_v1 = vpack.i.bf16 %v2562_v0, %v2550_v59 }
 0x25a   :  { %2131 = vmatmul.msk.f32.vlgmr.msra.gmra.mxu2 %vm209_vm8, %v2550_v59 }
 0x25e   :  { %v235_v2 = vpop.permute.xlu2 %234 }
 0x25f   :  { %2124 = vmatpush.xpose.msk.msrb.mxu0 %vm209_vm8, %v235_v2 }
 0x262   :  { %2125 = vmatmul.msk.f32.vlgmr.msrb.gmra.mxu0 %vm209_vm8, %v2532_v57 }
 0x266   :  { %v261_v3 = vpop.permute.xlu0 %260 }
 0x267   :  { %2126 = vmatpush.xpose.msk.msra.mxu3 %vm209_vm8, %v261_v3 }
 0x26a   :  { %2127 = vmatmul.msk.f32.vlgmr.msra.gmra.mxu3 %vm209_vm8, %v2546_v58 }
 0x286   :  { %v391_v4 = vpop.permute.xlu0 %390 }
 0x287   :  { %v287_v5 = vpop.permute.xlu1 %286  ;;  %2136 = vmatpush.xpose.msk.msrb.mxu2 %vm209_vm8, %v391_v4 }
 0x288   :  { %2128 = vmatpush.xpose.msk.msrb.mxu1 %vm209_vm8, %v287_v5 }
 0x28a   :  { %2137 = vmatmul.msk.f32.vlgmr.msrb.gmra.mxu2 %vm209_vm8, %v2560_v63 }
 0x28b   :  { %2129 = vmatmul.msk.f32.vlgmr.msrb.gmra.mxu1 %vm209_vm8, %v2562_v0 }
 0x28e   :  { %v339_v6 = vpop.permute.xlu0 %338 }
 0x28f   :  { %v365_v8 = vpop.permute.xlu1 %364  ;;  %2132 = vmatpush.xpose.msk.msrb.mxu3 %vm209_vm8, %v339_v6 }
 0x290   :  { %2134 = vmatpush.xpose.msk.msra.mxu1 %vm209_vm8, %v365_v8 }
 0x292   :  { %2133 = vmatmul.msk.f32.vlgmr.msrb.gmra.mxu3 %vm209_vm8, %v2558_v61 }
 0x293   :  { %2135 = vmatmul.msk.f32.vlgmr.msra.gmra.mxu1 %vm209_vm8, %v2554_v60 }
 0x294   :  { %v231_v11 = vpop.f32.mrf.mxu1 }
 0x295   :  { %v232_v12 = vadd.f32 %v231_v11, %v191_v9 }
 0x297   :  { %v416_v13 = vsel %vm209_vm8, %v232_v12, -inf }
 0x298   :  { %417 = vmax.xlane.f32.xlu2 %v416_v13 }
 0x2dd   :  { %v335_v16 = vpop.f32.mrf.mxu2 }
 0x2de   :  { %v336_v17 = vadd.f32 %v335_v16, %v2606_v15 }
 0x2df   :  { %v257_v26 = vpop.f32.mrf.mxu0 }
 0x2e0   :  { %v428_v18 = vsel %vm209_vm8, %v336_v17, -inf  ;;  %v258_v27 = vadd.f32 %v257_v26, %v2615_v24 }
 0x2e1   :  { %429 = vmax.xlane.f32.xlu0 %v428_v18 }
 0x2e2   :  { %v419_v28 = vsel %vm209_vm8, %v258_v27, -inf }
 0x2ed   :  { %v283_v22 = vpop.f32.mrf.mxu3 }
 0x2ee   :  { %v284_v23 = vadd.f32 %v283_v22, %v2611_v20 }
 0x2f0   :  { %v422_v25 = vsel %vm209_vm8, %v284_v23, -inf }
 0x2f1   :  { %423 = vmax.xlane.f32.xlu1 %v422_v25 }
 0x2f9   :  { %420 = vmax.xlane.f32.xlu1 %v419_v28 }
 0x308   :  { %v309_v32 = vpop.f32.mrf.mxu1 }
 0x309   :  { %v310_v33 = vadd.f32 %v309_v32, %v2621_v30 }
 0x30b   :  { %v418_v34 = vpop.xlane.xlu2 %417  ;;  %v425_v35 = vsel %vm209_vm8, %v310_v33, -inf }
 0x30c   :  { %v440_v37 = vsub.f32 %v232_v12, %v418_v34  ;;  %426 = vmax.xlane.f32.xlu2 %v425_v35 }
 0x30d   :  { %v413_v38 = vpop.f32.mrf.mxu2 }
 0x30e   :  { %v448_v39 = vmul.f32 1.442695, %v440_v37  ;;  %v414_v41 = vadd.f32 %v413_v38, %v2626_v36 }
 0x310   :  { %2279 = vpow2.f32 %v448_v39  ;;  %v437_v44 = vsel %vm209_vm8, %v414_v41, -inf  ;;  %v387_v51 = vpop.f32.mrf.mxu1 }
 0x311   :  { %v388_v54 = vadd.f32 %v387_v51, %v2637_v49 }
 0x313   :  { %v434_v56 = vsel %vm209_vm8, %v388_v54, -inf }
 0x314   :  { %438 = vmax.xlane.f32.xlu2 %v437_v44 }
 0x315   :  { %v361_v45 = vpop.f32.mrf.mxu3 }
 0x316   :  { %v2634_v46 = vpop.eup %2279  ;;  %v362_v48 = vadd.f32 %v361_v45, %v2630_v42 }
 0x317   :  { %v464_v50 = vsel %vm209_vm8, %v2634_v46, 0.0 }
 0x318   :  { %465 = vadd.xlane.f32.xlu0 %v464_v50  ;;  %v431_v53 = vsel %vm209_vm8, %v362_v48, -inf }
 0x319   :  { %432 = vmax.xlane.f32.xlu1 %v431_v53 }
 0x320   :  { %435 = vmax.xlane.f32.xlu0 %v434_v56 }
 0x32c   :  { %2224 = vrot.lane.b32.xlu2 %v2223_v62, %s3220_s1 }
 0x334   :  { %2229 = vrot.lane.b32.xlu0 %v2228_v1, %s3220_s1 }
 0x354   :  { %v430_v2 = vpop.xlane.xlu0 %429 }
 0x355   :  { %v444_v3 = vsub.f32 %v336_v17, %v430_v2 }
 0x357   :  { %v456_v4 = vmul.f32 1.442695, %v444_v3 }
 0x359   :  { %2281 = vpow2.f32 %v456_v4 }
 0x35f   :  { %v2650_v5 = vpop.eup %2281 }
 0x360   :  { %v476_v6 = vsel %vm209_vm8, %v2650_v5, 0.0 }
 0x361   :  { %477 = vadd.xlane.f32.xlu1 %v476_v6 }
 0x364   :  { %v424_v8 = vpop.xlane.xlu1 %423 }
 0x365   :  { %v442_v11 = vsub.f32 %v284_v23, %v424_v8 }
 0x367   :  { %v452_v13 = vmul.f32 1.442695, %v442_v11 }
 0x36c   :  { %v421_v55 = vpop.xlane.xlu1 %420 }
 0x36d   :  { %v441_v58 = vsub.f32 %v258_v27, %v421_v55  ;;  %v2233_v55 = vpack.i.bf16 %v2554_v60, %v2532_v57 }
 0x36f   :  { %v450_v12 = vmul.f32 1.442695, %v441_v58 }
 0x371   :  { %2283 = vpow2.f32 %v450_v12 }
 0x372   :  { %2285 = vpow2.f32 %v452_v13 }
 0x377   :  { %v2654_v59 = vpop.eup %2283 }
 0x378   :  { %v467_v0 = vsel %vm209_vm8, %v2654_v59, 0.0  ;;  %v2658_v14 = vpop.eup %2285 }
 0x379   :  { %468 = vadd.xlane.f32.xlu2 %v467_v0  ;;  %v470_v18 = vsel %vm209_vm8, %v2658_v14, 0.0 }
 0x37f   :  { %v427_v16 = vpop.xlane.xlu2 %426 }
 0x380   :  { %v443_v17 = vsub.f32 %v310_v33, %v427_v16 }
 0x381   :  { %471 = vadd.xlane.f32.xlu2 %v470_v18 }
 0x382   :  { %v454_v19 = vmul.f32 1.442695, %v443_v17 }
 0x384   :  { %2287 = vpow2.f32 %v454_v19 }
 0x387   :  { %v439_v21 = vpop.xlane.xlu2 %438 }
 0x388   :  { %v447_v22 = vsub.f32 %v414_v41, %v439_v21 }
 0x38a   :  { %v2662_v23 = vpop.eup %2287  ;;  %v462_v25 = vmul.f32 1.442695, %v447_v22 }
 0x38b   :  { %v473_v26 = vsel %vm209_vm8, %v2662_v23, 0.0  ;;  %v466_v27 = vpop.xlane.xlu0 %465 }
 0x38c   :  { %2289 = vpow2.f32 %v462_v25  ;;  %474 = vadd.xlane.f32.xlu0 %v473_v26  ;;  %v433_v28 = vpop.xlane.xlu1 %432  ;;  %v499_v50 = vand.u32 2147483648, %v466_v27  ;;  %vm493_vm10 = vweird.f32 %v466_v27 }
 0x38d   :  { %2291 = vrcp.f32 %v466_v27  ;;  %v445_v29 = vsub.f32 %v362_v48, %v433_v28  ;;  %v497_v48 = vand.u32 2147483647, %v466_v27 }
 0x38f   :  { %v458_v31 = vmul.f32 1.442695, %v445_v29  ;;  %v2225_v32 = vpop.permute.xlu2 %2224  ;;  %vm498_vm12 = vcmp.eq.f32.partialorder %v497_v48, 8.507059e+37 }
 0x390   :  { %v2227_v33 = vunpack.i.h.bf16 %v2225_v32  ;;  %v2226_v34 = vunpack.i.l.bf16 %v2225_v32 }
 0x391   :  { %2293 = vpow2.f32 %v458_v31 }
 0x392   :  { %v2666_v35 = vpop.eup %2289  ;;  %629 = vmatpush.msra.mxu3 %v2226_v34  ;;  %681 = vmatpush.msrb.mxu1 %v2227_v33 }
 0x393   :  { %v2292_v37 = vpop.eup %2291  ;;  %v485_v38 = vsel %vm209_vm8, %v2666_v35, 0.0  ;;  %v436_v39 = vpop.xlane.xlu0 %435 }
 0x394   :  { %v489_v40 = vmul.f32 %v2292_v37, %v466_v27  ;;  %486 = vadd.xlane.f32.xlu0 %v485_v38  ;;  %v446_v41 = vsub.f32 %v388_v54, %v436_v39  ;;  %vm494_vm9 = vweird.f32 %v2292_v37  ;;  %v500_v54 = vor.u32 1.1754944e-38, %v499_v50 }
 0x395   :  { %vm495_vm11 = vmor %vm493_vm10, %vm494_vm9 }
 0x396   :  { %v490_v43 = vsub.f32 1.0, %v489_v40  ;;  %v460_v44 = vmul.f32 1.442695, %v446_v41 }
 0x397   :  { %v2670_v45 = vpop.eup %2293 }
 0x398   :  { %v491_v51 = vmul.f32 %v2292_v37, %v490_v43  ;;  %2295 = vpow2.f32 %v460_v44  ;;  %v479_v53 = vsel %vm209_vm8, %v2670_v45, 0.0 }
 0x399   :  { %790 = vrot.lane.b32.xlu2 %v2560_v63, %s3220_s1  ;;  %480 = vadd.xlane.f32.xlu1 %v479_v53 }
 0x39a   :  { %v492_v56 = vadd.f32 %v2292_v37, %v491_v51 }
 0x39c   :  { %v496_v62 = vsel %vm495_vm11, %v2292_v37, %v492_v56 }
 0x39d   :  { %v501_v1 = vsel %vm498_vm12, %v500_v54, %v496_v62 }
 0x39e   :  { %v2676_v2 = vpop.eup %2295  ;;  %v502_v3 = vmul.f32 %v2634_v46, %v501_v1 }
 0x39f   :  { %v482_v4 = vsel %vm209_vm8, %v2676_v2, 0.0 }
 0x3a0   :  { %2138 = vmatmul.msk.f32.vlgmr.msra.gmra.mxu3 %vm209_vm8, %v502_v3 }
 0x3a1   :  { %483 = vadd.xlane.f32.xlu1 %v482_v4 }
 0x3a6   :  { %v2230_v6 = vpop.permute.xlu0 %2229 }
 0x3a7   :  { %v2232_v63 = vunpack.i.h.bf16 %v2230_v6  ;;  %v2231_v8 = vunpack.i.l.bf16 %v2230_v6 }
 0x3a8   :  { %738 = vrot.lane.b32.xlu0 %v2558_v61, %s3220_s1 }
 0x3a9   :  { %707 = vmatpush.msra.mxu2 %v2232_v63  ;;  %733 = vmatpush.msrb.mxu3 %v2231_v8 }
 0x3ba   :  { %2234 = vrot.lane.b32.xlu1 %v2233_v55, %s3220_s1 }
 0x3d4   :  { %v478_v46 = vpop.xlane.xlu1 %477 }
 0x3d5   :  { %2297 = vrcp.f32 %v478_v46  ;;  %v559_v13 = vand.u32 2147483648, %v478_v46  ;;  %v557_v16 = vand.u32 2147483647, %v478_v46  ;;  %vm553_vm14 = vweird.f32 %v478_v46 }
 0x3d7   :  { %v560_v61 = vor.u32 1.1754944e-38, %v559_v13  ;;  %vm558_vm1 = vcmp.eq.f32.partialorder %v557_v16, 8.507059e+37 }
 0x3db   :  { %v2298_v58 = vpop.eup %2297 }
 0x3dc   :  { %v549_v11 = vmul.f32 %v2298_v58, %v478_v46  ;;  %vm554_vm13 = vweird.f32 %v2298_v58 }
 0x3dd   :  { %vm555_vm15 = vmor %vm553_vm14, %vm554_vm13 }
 0x3de   :  { %v550_v12 = vsub.f32 1.0, %v549_v11 }
 0x3e0   :  { %v551_v0 = vmul.f32 %v2298_v58, %v550_v12 }
 0x3e2   :  { %v552_v17 = vadd.f32 %v2298_v58, %v551_v0 }
 0x3e4   :  { %v556_v18 = vsel %vm555_vm15, %v2298_v58, %v552_v17 }
 0x3e5   :  { %v561_v19 = vsel %vm558_vm1, %v560_v61, %v556_v18 }
 0x3e6   :  { %v562_v57 = vmul.f32 %v2650_v5, %v561_v19 }
 0x3e8   :  { %2142 = vmatmul.msk.f32.vlgmr.msrb.gmra.mxu3 %vm209_vm8, %v562_v57 }
 0x3ec   :  { %v2689_v60 = vpop.xlane.xlu2 %468 }
 0x3f4   :  { %v472_v21 = vpop.xlane.xlu2 %471 }
 0x3f5   :  { %2299 = vrcp.f32 %v472_v21  ;;  %v529_v28 = vand.u32 2147483648, %v472_v21  ;;  %v527_v32 = vand.u32 2147483647, %v472_v21  ;;  %vm523_vm3 = vweird.f32 %v472_v21 }
 0x3f7   :  { %v530_v5 = vor.u32 1.1754944e-38, %v529_v28  ;;  %vm528_vm5 = vcmp.eq.f32.partialorder %v527_v32, 8.507059e+37 }
 0x3fb   :  { %v2300_v22 = vpop.eup %2299 }
 0x3fc   :  { %v519_v25 = vmul.f32 %v2300_v22, %v472_v21  ;;  %v791_v26 = vpop.permute.xlu2 %790  ;;  %vm524_vm2 = vweird.f32 %v2300_v22 }
 0x3fd   :  { %811 = vmatpush.msrb.mxu2 %v791_v26  ;;  %vm525_vm4 = vmor %vm523_vm3, %vm524_vm2  ;;  %vm508_vm2 = vweird.f32 %v2689_v60 }
 0x3fe   :  { %v520_v27 = vsub.f32 1.0, %v519_v25 }
 0x3ff   :  { %v475_v29 = vpop.xlane.xlu0 %474 }
 0x400   :  { %v521_v31 = vmul.f32 %v2300_v22, %v520_v27  ;;  %2301 = vrcp.f32 %v475_v29  ;;  %v544_v44 = vand.u32 2147483648, %v475_v29  ;;  %v542_v50 = vand.u32 2147483647, %v475_v29 }
 0x401   :  { %vm538_vm7 = vweird.f32 %v475_v29 }
 0x402   :  { %v522_v33 = vadd.f32 %v2300_v22, %v521_v31  ;;  %v545_v54 = vor.u32 1.1754944e-38, %v544_v44  ;;  %vm543_vm10 = vcmp.eq.f32.partialorder %v542_v50, 8.507059e+37 }
 0x404   :  { %v526_v34 = vsel %vm525_vm4, %v2300_v22, %v522_v33 }
 0x405   :  { %v531_v37 = vsel %vm528_vm5, %v530_v5, %v526_v34 }
 0x406   :  { %v2302_v38 = vpop.eup %2301  ;;  %v532_v39 = vmul.f32 %v2658_v14, %v531_v37 }
 0x407   :  { %v534_v40 = vmul.f32 %v2302_v38, %v475_v29  ;;  %v487_v41 = vpop.xlane.xlu0 %486  ;;  %vm539_vm6 = vweird.f32 %v2302_v38  ;;  %v512_v29 = vand.u32 2147483647, %v2689_v60 }
 0x408   :  { %2303 = vrcp.f32 %v487_v41  ;;  %2140 = vmatmul.msk.f32.vlgmr.msrb.gmra.mxu1 %vm209_vm8, %v532_v39  ;;  %vm540_vm9 = vmor %vm538_vm7, %vm539_vm6  ;;  %v604_v6 = vand.u32 2147483648, %v487_v41  ;;  %v602_v8 = vand.u32 2147483647, %v487_v41  ;;  %vm598_vm12 = vweird.f32 %v487_v41 }
 0x409   :  { %v535_v43 = vsub.f32 1.0, %v534_v40  ;;  %2305 = vrcp.f32 %v2689_v60  ;;  %vm513_vm6 = vcmp.eq.f32.partialorder %v512_v29, 8.507059e+37 }
 0x40a   :  { %v605_v11 = vor.u32 1.1754944e-38, %v604_v6  ;;  %vm603_vm14 = vcmp.eq.f32.partialorder %v602_v8, 8.507059e+37  ;;  %v851_v8 = vld [vmem:[%s3201_s6 + $0x18] sm:$0xff] }
 0x40b   :  { %v536_v48 = vmul.f32 %v2302_v38, %v535_v43  ;;  %874 = vmatpush.msra.mxu3 %v851_v8 }
 0x40c   :  { %v2693_v51 = vpop.xlane.xlu1 %480 }
 0x40d   :  { %v537_v53 = vadd.f32 %v2302_v38, %v536_v48  ;;  %v574_v43 = vand.u32 2147483648, %v2693_v51 }
 0x40e   :  { %v2304_v56 = vpop.eup %2303 }
 0x40f   :  { %v541_v14 = vsel %vm540_vm9, %v2302_v38, %v537_v53  ;;  %v594_v62 = vmul.f32 %v2304_v56, %v487_v41  ;;  %vm599_vm11 = vweird.f32 %v2304_v56  ;;  %v2306_v46 = vpop.eup %2305 }
 0x410   :  { %v546_v1 = vsel %vm543_vm10, %v545_v54, %v541_v14  ;;  %vm600_vm13 = vmor %vm598_vm12, %vm599_vm11  ;;  %v504_v13 = vmul.f32 %v2306_v46, %v2689_v60  ;;  %vm509_vm15 = vweird.f32 %v2306_v46  ;;  %vm568_vm10 = vweird.f32 %v2693_v51 }
 0x411   :  { %v595_v3 = vsub.f32 1.0, %v594_v62  ;;  %v547_v4 = vmul.f32 %v2662_v23, %v546_v1  ;;  %vm510_vm3 = vmor %vm508_vm2, %vm509_vm15  ;;  %v575_v14 = vor.u32 1.1754944e-38, %v574_v43 }
 0x412   :  { %v505_v17 = vsub.f32 1.0, %v504_v13 }
 0x413   :  { %v596_v63 = vmul.f32 %v2304_v56, %v595_v3  ;;  %2141 = vmatmul.msk.f32.vlgmr.msra.gmra.mxu2 %vm209_vm8, %v547_v4 }
 0x414   :  { %v484_v55 = vpop.xlane.xlu1 %483  ;;  %v506_v57 = vmul.f32 %v2306_v46, %v505_v17 }
 0x415   :  { %v597_v58 = vadd.f32 %v2304_v56, %v596_v63  ;;  %2307 = vrcp.f32 %v484_v55  ;;  %v589_v28 = vand.u32 2147483648, %v484_v55  ;;  %vm583_vm4 = vweird.f32 %v484_v55 }
 0x416   :  { %2309 = vrcp.f32 %v2693_v51  ;;  %v507_v25 = vadd.f32 %v2306_v46, %v506_v57  ;;  %v587_v31 = vand.u32 2147483647, %v484_v55 }
 0x417   :  { %v601_v12 = vsel %vm600_vm13, %v2304_v56, %v597_v58  ;;  %v590_v37 = vor.u32 1.1754944e-38, %v589_v28  ;;  %v848_v58 = vld [vmem:[%s3201_s6] sm:$0xff]  ;;  %vm842_vm13 = vcmask 130048  }
 0x418   :  { %v606_v23 = vsel %vm603_vm14, %v605_v11, %v601_v12  ;;  %v511_v32 = vsel %vm510_vm3, %v2306_v46, %v507_v25  ;;  %vm588_vm7 = vcmp.eq.f32.partialorder %v587_v31, 8.507059e+37  ;;  %v849_v46 = vld [vmem:[%s3201_s6 + $0x8] sm:$0xff]  ;;  %vm845_vm14 = vcmask 195584  }
 0x419   :  { %v607_v0 = vmul.f32 %v2666_v35, %v606_v23  ;;  %v514_v35 = vand.u32 2147483648, %v2689_v60  ;;  %v572_v60 = vand.u32 2147483647, %v2693_v51 }
 0x41a   :  { %v739_v54 = vpop.permute.xlu0 %738 }
 0x41b   :  { %v2308_v16 = vpop.eup %2307  ;;  %2145 = vmatmul.msk.f32.vlgmr.msrb.gmra.mxu2 %vm209_vm8, %v607_v0  ;;  %v515_v34 = vor.u32 1.1754944e-38, %v514_v35  ;;  %vm573_vm12 = vcmp.eq.f32.partialorder %v572_v60, 8.507059e+37  ;;  %v943_v60 = vld [vmem:[%s3205_s10] sm:$0xff] }
 0x41c   :  { %v579_v61 = vmul.f32 %v2308_v16, %v484_v55  ;;  %v2310_v18 = vpop.eup %2309  ;;  %vm584_vm1 = vweird.f32 %v2308_v16  ;;  %v850_v55 = vld [vmem:[%s3201_s6 + $0x10] sm:$0xff] }
 0x41d   :  { %v564_v21 = vmul.f32 %v2310_v18, %v2693_v51  ;;  %vm585_vm5 = vmor %vm583_vm4, %vm584_vm1  ;;  %v516_v38 = vsel %vm513_vm6, %v515_v34, %v511_v32  ;;  %vm569_vm9 = vweird.f32 %v2310_v18  ;;  %875 = vmatpush.msra.mxu3 %v850_v55  ;;  %vm1010_vm6 = vcmask 523264  }
 0x41e   :  { %v580_v19 = vsub.f32 1.0, %v579_v61  ;;  %v517_v50 = vmul.f32 %v2654_v59, %v516_v38  ;;  %vm570_vm11 = vmor %vm568_vm10, %vm569_vm9 }
 0x41f   :  { %v565_v26 = vsub.f32 1.0, %v564_v21  ;;  %876 = vmatpush.msra.mxu3 %v849_v46 }
 0x420   :  { %v581_v22 = vmul.f32 %v2308_v16, %v580_v19 }
 0x421   :  { %v566_v33 = vmul.f32 %v2310_v18, %v565_v26  ;;  %877 = vmatpush.msra.mxu3 %v848_v58  ;;  %v2258_v58 = vld [vmem:[%s3203_s9] ss:$0 sm:$0xff] }
 0x422   :  { %v582_v27 = vadd.f32 %v2308_v16, %v581_v22  ;;  %v2256_v22 = vld [vmem:[%s3200_s7] ss:$0 sm:$0xff] }
 0x423   :  { %v567_v40 = vadd.f32 %v2310_v18, %v566_v33  ;;  %v631_v59 = vpop.f32.mrf.mxu3 }
 0x424   :  { %v586_v5 = vsel %vm585_vm5, %v2308_v16, %v582_v27 }
 0x425   :  { %v591_v39 = vsel %vm588_vm7, %v590_v37, %v586_v5  ;;  %v571_v56 = vsel %vm570_vm11, %v2310_v18, %v567_v40 }
 0x426   :  { %v592_v53 = vmul.f32 %v2676_v2, %v591_v39  ;;  %v576_v62 = vsel %vm573_vm12, %v575_v14, %v571_v56 }
 0x427   :  { %v577_v1 = vmul.f32 %v2670_v45, %v576_v62 }
 0x42c   :  { %v2235_v41 = vpop.permute.xlu1 %2234 }
 0x42d   :  { %v2237_v44 = vunpack.i.h.bf16 %v2235_v41  ;;  %v2236_v48 = vunpack.i.l.bf16 %v2235_v41 }
 0x42f   :  { %655 = vmatpush.msra.mxu0 %v2236_v48  ;;  %785 = vmatpush.msra.mxu1 %v2237_v44  ;;  %v945_v44 = vld [vmem:[%s3205_s10 + $0x10] sm:$0xff]  ;;  %v944_v48 = vld [vmem:[%s3205_s10 + $0x8] sm:$0xff] }
 0x430   :  { %2139 = vmatmul.msk.f32.vlgmr.msra.gmra.mxu0 %vm209_vm8, %v517_v50  ;;  %2144 = vmatmul.msk.f32.vlgmr.msra.gmra.mxu1 %vm209_vm8, %v592_v53 }
 0x431   :  { %759 = vmatpush.msrb.mxu0 %v739_v54 }
 0x438   :  { %2143 = vmatmul.msk.f32.vlgmr.msrb.gmra.mxu0 %vm209_vm8, %v577_v1 }
 0x46b   :  { %v735_v51 = vpop.f32.mrf.mxu3 }
 0x46c   :  { %826 = vrot.lane.b32.xlu0 %v735_v51, %s3222_s2 }
 0x485   :  { %v683_v2 = vpop.f32.mrf.mxu1 }
 0x486   :  { %818 = vrot.lane.b32.xlu2 %v683_v2, %s3218_s22 }
 0x496   :  { %v709_v3 = vpop.f32.mrf.mxu2 }
 0x497   :  { %820 = vrot.lane.b32.xlu2 %v709_v3, %s3218_s22 }
 0x49e   :  { %v813_v45 = vpop.f32.mrf.mxu2 }
 0x4ad   :  { %v657_v4 = vpop.f32.mrf.mxu0  ;;  %v787_v6 = vpop.f32.mrf.mxu1 }
 0x4ae   :  { %834 = vrot.lane.b32.xlu1 %v787_v6, %s3224_s23 }
 0x4b5   :  { %v761_v63 = vpop.f32.mrf.mxu0 }
 0x4b6   :  { %836 = vrot.lane.b32.xlu1 %v813_v45, %s3224_s23  ;;  %828 = vrot.lane.b32.xlu0 %v761_v63, %s3222_s2  ;;  %v2257_v45 = vld [vmem:[%s3202_s8] ss:$0 sm:$0xff] }
 0x4de   :  { %v827_v13 = vpop.permute.xlu0 %826 }
 0x4e0   :  { %v819_v11 = vpop.permute.xlu2 %818 }
 0x4e1   :  { %v840_v12 = vsel %vm209_vm8, %v631_v59, %v819_v11 }
 0x4e2   :  { %v843_v0 = vsel %vm842_vm13, %v840_v12, %v827_v13 }
 0x4f1   :  { %v821_v17 = vpop.permute.xlu2 %820 }
 0x4f2   :  { %v841_v61 = vsel %vm209_vm8, %v657_v4, %v821_v17 }
 0x520   :  { %v835_v23 = vpop.permute.xlu1 %834 }
 0x521   :  { %v846_v16 = vsel %vm845_vm14, %v843_v0, %v835_v23 }
 0x522   :  { %2146 = vmatmul.msk.f32.vlgmr.msra.gmra.mxu3 %vm69_vm0, %v846_v16 }
 0x528   :  { %v837_v18 = vpop.permute.xlu1 %836  ;;  %v829_v19 = vpop.permute.xlu0 %828 }
 0x529   :  { %v844_v57 = vsel %vm842_vm13, %v841_v61, %v829_v19  ;;  %v1005_v19 = vld [vmem:[%s3207_s12 + $0x38] sm:$0xff] }
 0x52a   :  { %v847_v21 = vsel %vm845_vm14, %v844_v57, %v837_v18  ;;  %1025 = vmatpush.msrb.mxu1 %v1005_v19  ;;  %v1004_v57 = vld [vmem:[%s3207_s12 + $0x30] sm:$0xff] }
 0x52b   :  { %2147 = vmatmul.msk.f32.gmra.mxu3 %vm69_vm0, %v847_v21  ;;  %v1003_v21 = vld [vmem:[%s3207_s12 + $0x28] sm:$0xff] }
 0x52c   :  { %1026 = vmatpush.msrb.mxu1 %v1004_v57 }
 0x52e   :  { %1027 = vmatpush.msrb.mxu1 %v1003_v21 }
 0x5a5   :  { %v879_v25 = vpop.f32.mrf.mxu3 }
 0x5a6   :  { %v880_v26 = vadd.f32 %v2256_v22, %v879_v25  ;;  %v1001_v25 = vld [vmem:[%s3207_s12 + $0x18] sm:$0xff] }
 0x5a8   :  { %v885_v27 = vadd.f32 %v880_v26, %v2517_v47  ;;  %v1000_v26 = vld [vmem:[%s3207_s12 + $0x10] sm:$0xff] }
 0x5aa   :  { %v889_v35 = vsel %vm69_vm0, %v885_v27, 0.0 }
 0x5ab   :  { %890 = vadd.xlane.f32.xlu2 %v889_v35  ;;  %v998_v35 = vld [vmem:[%s3207_s12] sm:$0xff] }
 0x5ae   :  { %v882_v28 = vpop.f32.mrf.mxu3 }
 0x5af   :  { %v883_v29 = vadd.f32 %v2256_v22, %v882_v28  ;;  %v1002_v22 = vld [vmem:[%s3207_s12 + $0x20] sm:$0xff] }
 0x5b0   :  { %1028 = vmatpush.msrb.mxu1 %v1002_v22  ;;  %v2259_v28 = vld [vmem:[%s3204_s11] ss:$0 sm:$0xff] }
 0x5b1   :  { %v886_v31 = vadd.f32 %v883_v29, %v2521_v52  ;;  %v946_v52 = vld [vmem:[%s3205_s10 + $0x18] sm:$0xff] }
 0x5b2   :  { %969 = vmatpush.msra.mxu0 %v946_v52  ;;  %1029 = vmatpush.msrb.mxu1 %v1001_v25 }
 0x5b3   :  { %v892_v32 = vsel %vm69_vm0, %v886_v31, 0.0 }
 0x5b4   :  { %893 = vadd.xlane.f32.xlu0 %v892_v32  ;;  %970 = vmatpush.msra.mxu0 %v945_v44 }
 0x5b5   :  { %1030 = vmatpush.msrb.mxu1 %v1000_v26 }
 0x5b6   :  { %971 = vmatpush.msra.mxu0 %v944_v48 }
 0x5b8   :  { %972 = vmatpush.msra.mxu0 %v943_v60 }
 0x61e   :  { %v891_v33 = vpop.xlane.xlu2 %890 }
 0x61f   :  { %v895_v5 = vmul.f32 %v891_v33, %v2491_v10 }
 0x621   :  { %v897_v34 = vsub.f32 %v885_v27, %v895_v5  ;;  %v999_v27 = vld [vmem:[%s3207_s12 + $0x8] sm:$0xff] }
 0x622   :  { %1031 = vmatpush.msrb.mxu1 %v999_v27 }
 0x623   :  { %v899_v37 = vmul.f32 %v897_v34, %v897_v34 }
 0x624   :  { %1032 = vmatpush.msrb.mxu1 %v998_v35 }
 0x625   :  { %v901_v38 = vsel %vm69_vm0, %v899_v37, 0.0 }
 0x626   :  { %902 = vadd.xlane.f32.xlu1 %v901_v38 }
 0x627   :  { %v894_v39 = vpop.xlane.xlu0 %893 }
 0x628   :  { %v896_v47 = vmul.f32 %v894_v39, %v2491_v10 }
 0x62a   :  { %v898_v40 = vsub.f32 %v886_v31, %v896_v47 }
 0x62c   :  { %v900_v41 = vmul.f32 %v898_v40, %v898_v40 }
 0x62e   :  { %v904_v43 = vsel %vm69_vm0, %v900_v41, 0.0 }
 0x62f   :  { %905 = vadd.xlane.f32.xlu2 %v904_v43 }
 0x699   :  { %v903_v50 = vpop.xlane.xlu1 %902 }
 0x69a   :  { %v907_v53 = vmul.f32 %v903_v50, %v2491_v10 }
 0x69c   :  { %v909_v56 = vadd.f32 1e-12, %v907_v53 }
 0x69e   :  { %2311 = vrsqrt.f32 %v909_v56  ;;  %vm917_vm1 = vweird.f32 %v909_v56 }
 0x6a2   :  { %v906_v54 = vpop.xlane.xlu2 %905 }
 0x6a3   :  { %v908_v14 = vmul.f32 %v906_v54, %v2491_v10 }
 0x6a4   :  { %v2312_v62 = vpop.eup %2311 }
 0x6a5   :  { %v912_v1 = vmul.f32 %v2312_v62, %v909_v56  ;;  %v910_v59 = vadd.f32 1e-12, %v908_v14  ;;  %vm918_vm15 = vweird.f32 %v2312_v62 }
 0x6a6   :  { %vm919_vm2 = vmor %vm917_vm1, %vm918_vm15 }
 0x6a7   :  { %v913_v51 = vmul.f32 %v2312_v62, %v912_v1  ;;  %2313 = vrsqrt.f32 %v910_v59  ;;  %vm927_vm4 = vweird.f32 %v910_v59 }
 0x6a9   :  { %v914_v2 = vmul.f32 0.5, %v913_v51 }
 0x6ab   :  { %v915_v3 = vsub.f32 1.5, %v914_v2 }
 0x6ad   :  { %v2314_v4 = vpop.eup %2313  ;;  %v916_v6 = vmul.f32 %v2312_v62, %v915_v3 }
 0x6ae   :  { %v922_v63 = vmul.f32 %v2314_v4, %v910_v59  ;;  %vm928_vm3 = vweird.f32 %v2314_v4 }
 0x6af   :  { %v920_v8 = vsel %vm919_vm2, %v2312_v62, %v916_v6  ;;  %vm929_vm5 = vmor %vm927_vm4, %vm928_vm3  ;;  %v2260_v62 = vld [vmem:[%s3206_s13] ss:$0 sm:$0xff] }
 0x6b0   :  { %v931_v55 = vmul.f32 %v920_v8, %v897_v34  ;;  %v923_v46 = vmul.f32 %v2314_v4, %v922_v63 }
 0x6b2   :  { %v936_v11 = vmul.f32 %v2257_v45, %v931_v55  ;;  %v924_v12 = vmul.f32 0.5, %v923_v46 }
 0x6b4   :  { %v925_v13 = vsub.f32 1.5, %v924_v12  ;;  %v941_v23 = vadd.f32 %v2258_v58, %v936_v11 }
 0x6b6   :  { %v926_v0 = vmul.f32 %v2314_v4, %v925_v13  ;;  %2148 = vmatmul.msk.f32.vlgmr.msra.gmra.mxu0 %vm69_vm0, %v941_v23 }
 0x6b8   :  { %v930_v16 = vsel %vm929_vm5, %v2314_v4, %v926_v0 }
 0x6b9   :  { %v932_v17 = vmul.f32 %v930_v16, %v898_v40  ;;  %v2155_v16 = vld [vmem:[%s3232_s26 + $0x38] sm:$0xff] }
 0x6ba   :  { %1126 = vmatpush.msra.mxu2 %v2155_v16 }
 0x6bb   :  { %v937_v61 = vmul.f32 %v2257_v45, %v932_v17  ;;  %v2154_v17 = vld [vmem:[%s3232_s26 + $0x30] sm:$0xff] }
 0x6bc   :  { %1127 = vmatpush.msra.mxu2 %v2154_v17 }
 0x6bd   :  { %v942_v18 = vadd.f32 %v2258_v58, %v937_v61  ;;  %v2153_v61 = vld [vmem:[%s3232_s26 + $0x28] sm:$0xff] }
 0x6be   :  { %1128 = vmatpush.msra.mxu2 %v2153_v61 }
 0x6bf   :  { %2149 = vmatmul.msk.f32.gmra.mxu0 %vm69_vm0, %v942_v18 }
 0x733   :  { %v974_v29 = vpop.f32.mrf.mxu0 }
 0x734   :  { %v975_v31 = vadd.f32 %v2259_v28, %v974_v29 }
 0x736   :  { %v982_v32 = vmul.f32 0.044715, %v975_v31  ;;  %v980_v44 = vmul.f32 0.5, %v975_v31 }
 0x738   :  { %v984_v33 = vmul.f32 %v982_v32, %v975_v31 }
 0x73a   :  { %v986_v5 = vmul.f32 %v984_v33, %v975_v31 }
 0x73c   :  { %v988_v34 = vadd.f32 %v986_v5, %v975_v31  ;;  %v977_v37 = vpop.f32.mrf.mxu0  ;;  %v2261_v5 = vld [vmem:[%s3208_s14] ss:$0 sm:$0xff] }
 0x73d   :  { %v978_v38 = vadd.f32 %v2259_v28, %v977_v37 }
 0x73e   :  { %v990_v39 = vmul.f32 0.7978846, %v988_v34 }
 0x73f   :  { %v983_v47 = vmul.f32 0.044715, %v978_v38  ;;  %v981_v56 = vmul.f32 0.5, %v978_v38 }
 0x740   :  { %2315 = vtanh.f32 %v990_v39 }
 0x741   :  { %v985_v40 = vmul.f32 %v983_v47, %v978_v38  ;;  %v2262_v47 = vld [vmem:[%s3209_s15] ss:$0 sm:$0xff] }
 0x743   :  { %v987_v41 = vmul.f32 %v985_v40, %v978_v38 }
 0x745   :  { %v989_v43 = vadd.f32 %v987_v41, %v978_v38 }
 0x746   :  { %v2316_v52 = vpop.eup %2315 }
 0x747   :  { %v994_v48 = vadd.f32 1.0, %v2316_v52  ;;  %v991_v60 = vmul.f32 0.7978846, %v989_v43 }
 0x749   :  { %v996_v50 = vmul.f32 %v994_v48, %v980_v44  ;;  %2317 = vtanh.f32 %v991_v60 }
 0x74b   :  { %2150 = vmatmul.msk.f32.vlgmr.msrb.gmra.mxu1 %vm1010_vm6, %v996_v50 }
 0x74f   :  { %v2318_v53 = vpop.eup %2317 }
 0x750   :  { %v995_v54 = vadd.f32 1.0, %v2318_v53 }
 0x752   :  { %v997_v14 = vmul.f32 %v995_v54, %v981_v56  ;;  %v2263_v56 = vld [vmem:[%s3235_s27 + $0x1] ss:$0 sm:$0xff]  ;;  %s3236_s27 = smov 112  }
 0x754   :  { %2151 = vmatmul.msk.f32.gmra.mxu1 %vm1010_vm6, %v997_v14 }
 0x7c8   :  { %v1034_v1 = vpop.f32.mrf.mxu1 }
 0x7c9   :  { %v1035_v59 = vadd.f32 %v2260_v62, %v1034_v1 }
 0x7cb   :  { %v1040_v51 = vadd.f32 %v1035_v59, %v941_v23 }
 0x7cd   :  { %v1044_v2 = vsel %vm69_vm0, %v1040_v51, 0.0 }
 0x7ce   :  { %1045 = vadd.xlane.f32.xlu0 %v1044_v2 }
 0x7d1   :  { %v1037_v3 = vpop.f32.mrf.mxu1 }
 0x7d2   :  { %v1038_v4 = vadd.f32 %v2260_v62, %v1037_v3 }
 0x7d4   :  { %v1041_v6 = vadd.f32 %v1038_v4, %v942_v18  ;;  %v2152_v18 = vld [vmem:[%s3232_s26 + $0x20] sm:$0xff] }
 0x7d5   :  { %1129 = vmatpush.msra.mxu2 %v2152_v18 }
 0x7d6   :  { %v1047_v45 = vsel %vm69_vm0, %v1041_v6, 0.0 }
 0x7d7   :  { %1048 = vadd.xlane.f32.xlu1 %v1047_v45 }
 0x841   :  { %v1046_v63 = vpop.xlane.xlu0 %1045 }
 0x842   :  { %v1050_v8 = vmul.f32 %v1046_v63, %v2491_v10 }
 0x844   :  { %v1052_v55 = vsub.f32 %v1040_v51, %v1050_v8 }
 0x846   :  { %v1054_v46 = vmul.f32 %v1052_v55, %v1052_v55 }
 0x848   :  { %v1056_v58 = vsel %vm69_vm0, %v1054_v46, 0.0 }
 0x849   :  { %1057 = vadd.xlane.f32.xlu2 %v1056_v58 }
 0x84a   :  { %v1049_v11 = vpop.xlane.xlu1 %1048 }
 0x84b   :  { %v1051_v12 = vmul.f32 %v1049_v11, %v2491_v10 }
 0x84d   :  { %v1053_v13 = vsub.f32 %v1041_v6, %v1051_v12 }
 0x84f   :  { %v1055_v23 = vmul.f32 %v1053_v13, %v1053_v13 }
 0x851   :  { %v1059_v0 = vsel %vm69_vm0, %v1055_v23, 0.0 }
 0x852   :  { %1060 = vadd.xlane.f32.xlu0 %v1059_v0 }
 0x8bc   :  { %v1058_v19 = vpop.xlane.xlu2 %1057 }
 0x8bd   :  { %v1062_v57 = vmul.f32 %v1058_v19, %v2491_v10 }
 0x8bf   :  { %v1064_v21 = vadd.f32 1e-12, %v1062_v57 }
 0x8c1   :  { %2319 = vrsqrt.f32 %v1064_v21  ;;  %vm1072_vm9 = vweird.f32 %v1064_v21 }
 0x8c5   :  { %v1061_v22 = vpop.xlane.xlu0 %1060 }
 0x8c6   :  { %v1063_v25 = vmul.f32 %v1061_v22, %v2491_v10 }
 0x8c7   :  { %v2320_v26 = vpop.eup %2319 }
 0x8c8   :  { %v1067_v27 = vmul.f32 %v2320_v26, %v1064_v21  ;;  %v1065_v35 = vadd.f32 1e-12, %v1063_v25  ;;  %vm1073_vm7 = vweird.f32 %v2320_v26 }
 0x8c9   :  { %vm1074_vm10 = vmor %vm1072_vm9, %vm1073_vm7 }
 0x8ca   :  { %v1068_v28 = vmul.f32 %v2320_v26, %v1067_v27  ;;  %2321 = vrsqrt.f32 %v1065_v35  ;;  %vm1082_vm12 = vweird.f32 %v1065_v35 }
 0x8cc   :  { %v1069_v29 = vmul.f32 0.5, %v1068_v28 }
 0x8ce   :  { %v1070_v31 = vsub.f32 1.5, %v1069_v29 }
 0x8d0   :  { %v2322_v32 = vpop.eup %2321  ;;  %v1071_v33 = vmul.f32 %v2320_v26, %v1070_v31 }
 0x8d1   :  { %v1077_v34 = vmul.f32 %v2322_v32, %v1065_v35  ;;  %vm1083_vm11 = vweird.f32 %v2322_v32 }
 0x8d2   :  { %v1075_v37 = vsel %vm1074_vm10, %v2320_v26, %v1071_v33  ;;  %vm1084_vm15 = vmor %vm1082_vm12, %vm1083_vm11 }
 0x8d3   :  { %v1086_v38 = vmul.f32 %v1075_v37, %v1052_v55  ;;  %v1078_v39 = vmul.f32 %v2322_v32, %v1077_v34 }
 0x8d5   :  { %v1091_v40 = vmul.f32 %v2261_v5, %v1086_v38  ;;  %v1079_v41 = vmul.f32 0.5, %v1078_v39 }
 0x8d7   :  { %v1080_v43 = vsub.f32 1.5, %v1079_v41  ;;  %v2832_v52 = vadd.f32 %v2262_v47, %v1091_v40 }
 0x8d9   :  { %v1081_v44 = vmul.f32 %v2322_v32, %v1080_v43  ;;  %2157 = vmatmul.msk.f32.vlgmr.msra.gmra.mxu2 %vm69_vm0, %v2832_v52 }
 0x8db   :  { %v1085_v48 = vsel %vm1084_vm15, %v2322_v32, %v1081_v44 }
 0x8dc   :  { %v1087_v60 = vmul.f32 %v1085_v48, %v1053_v13 }
 0x8de   :  { %v1092_v50 = vmul.f32 %v2261_v5, %v1087_v60 }
 0x8e0   :  { %v2836_v53 = vadd.f32 %v2262_v47, %v1092_v50 }
 0x8e2   :  { %2158 = vmatmul.msk.f32.gmra.mxu2 %vm69_vm0, %v2836_v53 }
 0x95c   :  { %v1131_v54 = vpop.f32.mrf.mxu2 }
 0x95d   :  { %v2843_v14 = vadd.f32 %v2263_v56, %v1131_v54 }
 0x95f   :  { %1147 = vrot.lane.b32.xlu0 %v2843_v14, %s2372_s29  ;;  %1139 = vrot.lane.b32.xlu1 %v2843_v14, %s2370_s28 }
 0x965   :  { %v1134_v62 = vpop.f32.mrf.mxu2 }
 0x966   :  { %v2849_v1 = vadd.f32 %v2263_v56, %v1134_v62 }
 0x967   :  { %1143 = vrot.lane.b32.xlu0 %v2843_v14, %s2371_s4 }
 0x968   :  { %1149 = vrot.lane.b32.xlu1 %v2849_v1, %s2372_s29  ;;  %1141 = vrot.lane.b32.xlu2 %v2849_v1, %s2370_s28  ;;  %s3241_s28 = smov 8   ;;  %s3243_s29 = smov 16  }
 0x970   :  { %1151 = vrot.lane.b32.xlu1 %v2843_v14, %s2373_s30  ;;  %1145 = vrot.lane.b32.xlu2 %v2849_v1, %s2371_s4  ;;  %s3242_s4 = smov 24  }
 0x9c2   :  { %v2861_v59 = vpop.permute.xlu2 %1141 }
 0x9c3   :  { %1229 = vrot.lane.b32.xlu2 %v2861_v59, %s2373_s30 }
 0x9ca   :  { %v2883_v6 = vpop.permute.xlu2 %1145 }
 0x9d1   :  { %v2865_v51 = vpop.permute.xlu1 %1139  ;;  %v2867_v2 = vpop.permute.xlu0 %1147 }
 0x9d2   :  { %1203 = vrot.lane.b32.xlu0 %v2865_v51, %s2373_s30  ;;  %1307 = vrot.lane.b32.xlu1 %v2867_v2, %s2373_s30 }
 0x9d9   :  { %v2873_v3 = vpop.permute.xlu0 %1143 }
 0x9da   :  { %1177 = vrot.lane.b32.xlu0 %v2849_v1, %s2373_s30  ;;  %v2877_v4 = vpop.permute.xlu1 %1149  ;;  %1255 = vrot.lane.b32.xlu1 %v2873_v3, %s2373_s30 }
 0x9db   :  { %1333 = vrot.lane.b32.xlu2 %v2877_v4, %s2373_s30 }
 0x9e2   :  { %v1152_v45 = vpop.permute.xlu1 %1151  ;;  %1281 = vrot.lane.b32.xlu0 %v2883_v6, %s2373_s30 }
 0x9e3   :  { %2159 = vmatpush.xpose.msk.msrb.mxu3 %vm209_vm8, %v1152_v45 }
 0x9e6   :  { %2160 = vmatmul.msk.f32.vlgmr.msrb.gmra.mxu3 %vm209_vm8, %v2843_v14 }
 0xa1d   :  { %v1230_v63 = vpop.permute.xlu2 %1229 }
 0xa1e   :  { %2165 = vmatpush.xpose.msk.msra.mxu3 %vm209_vm8, %v1230_v63 }
 0xa21   :  { %2166 = vmatmul.msk.f32.vlgmr.msra.gmra.mxu3 %vm209_vm8, %v2861_v59 }
 0xa35   :  { %v1334_v8 = vpop.permute.xlu2 %1333 }
 0xa36   :  { %2173 = vmatpush.xpose.msk.msrb.mxu3 %vm209_vm8, %v1334_v8 }
 0xa39   :  { %2174 = vmatmul.msk.f32.vlgmr.msrb.gmra.mxu3 %vm209_vm8, %v2877_v4 }
 0xa44   :  { %v1308_v55 = vpop.permute.xlu1 %1307  ;;  %v1204_v46 = vpop.permute.xlu0 %1203 }
 0xa45   :  { %2163 = vmatpush.xpose.msk.msrb.mxu2 %vm209_vm8, %v1204_v46 }
 0xa48   :  { %2164 = vmatmul.msk.f32.vlgmr.msrb.gmra.mxu2 %vm209_vm8, %v2865_v51 }
 0xa49   :  { %2171 = vmatpush.xpose.msk.msra.mxu2 %vm209_vm8, %v1308_v55 }
 0xa4c   :  { %v1256_v58 = vpop.permute.xlu1 %1255  ;;  %v1178_v11 = vpop.permute.xlu0 %1177 }
 0xa4d   :  { %2161 = vmatpush.xpose.msk.msrb.mxu0 %vm209_vm8, %v1178_v11 }
 0xa50   :  { %2162 = vmatmul.msk.f32.vlgmr.msrb.gmra.mxu0 %vm209_vm8, %v2849_v1  ;;  %2172 = vmatmul.msk.f32.vlgmr.msra.gmra.mxu2 %vm209_vm8, %v2867_v2 }
 0xa51   :  { %2167 = vmatpush.xpose.msk.msra.mxu0 %vm209_vm8, %v1256_v58 }
 0xa54   :  { %v1282_v12 = vpop.permute.xlu0 %1281 }
 0xa55   :  { %2169 = vmatpush.xpose.msk.msra.mxu1 %vm209_vm8, %v1282_v12 }
 0xa58   :  { %2168 = vmatmul.msk.f32.vlgmr.msra.gmra.mxu0 %vm209_vm8, %v2873_v3  ;;  %2170 = vmatmul.msk.f32.vlgmr.msra.gmra.mxu1 %vm209_vm8, %v2883_v6 }
 0xa69   :  { %v1174_v13 = vpop.f32.mrf.mxu3 }
 0xa6a   :  { %v1175_v23 = vadd.f32 %v1174_v13, %v191_v9 }
 0xa6c   :  { %v1359_v0 = vsel %vm209_vm8, %v1175_v23, -inf }
 0xa6d   :  { %1360 = vmax.xlane.f32.xlu1 %v1359_v0 }
 0xaa4   :  { %v1252_v57 = vpop.f32.mrf.mxu3 }
 0xabc   :  { %v1356_v35 = vpop.f32.mrf.mxu3 }
 0xabd   :  { %v1357_v29 = vadd.f32 %v1356_v35, %v2626_v36  ;;  %v2243_v36 = vpack.i.bf16 %v2867_v2, %v2861_v59 }
 0xabf   :  { %v1380_v31 = vsel %vm209_vm8, %v1357_v29, -inf }
 0xacb   :  { %v1226_v16 = vpop.f32.mrf.mxu2 }
 0xacc   :  { %v1227_v17 = vadd.f32 %v1226_v16, %v2611_v20 }
 0xacd   :  { %v1200_v61 = vpop.f32.mrf.mxu0 }
 0xace   :  { %v1201_v18 = vadd.f32 %v1200_v61, %v2615_v24  ;;  %v1365_v19 = vsel %vm209_vm8, %v1227_v17, -inf }
 0xacf   :  { %1366 = vmax.xlane.f32.xlu2 %v1365_v19 }
 0xad0   :  { %v1362_v21 = vsel %vm209_vm8, %v1201_v18, -inf }
 0xad1   :  { %1363 = vmax.xlane.f32.xlu1 %v1362_v21  ;;  %v2238_v21 = vpack.i.bf16 %v2843_v14, %v2865_v51 }
 0xad3   :  { %v1330_v22 = vpop.f32.mrf.mxu2 }
 0xad4   :  { %v1331_v7 = vadd.f32 %v1330_v22, %v2637_v49  ;;  %v1253_v49 = vadd.f32 %v1252_v57, %v2621_v30 }
 0xad5   :  { %v1278_v9 = vpop.f32.mrf.mxu0  ;;  %v1304_v25 = vpop.f32.mrf.mxu1 }
 0xad6   :  { %v1279_v26 = vadd.f32 %v1278_v9, %v2606_v15  ;;  %v1305_v27 = vadd.f32 %v1304_v25, %v2630_v42  ;;  %v1377_v20 = vsel %vm209_vm8, %v1331_v7, -inf  ;;  %v1368_v42 = vsel %vm209_vm8, %v1253_v49, -inf }
 0xad7   :  { %1378 = vmax.xlane.f32.xlu2 %v1377_v20  ;;  %v2248_v25 = vpack.i.bf16 %v2873_v3, %v2849_v1 }
 0xad8   :  { %v1371_v24 = vsel %vm209_vm8, %v1279_v26, -inf  ;;  %v1374_v28 = vsel %vm209_vm8, %v1305_v27, -inf }
 0xad9   :  { %1372 = vmax.xlane.f32.xlu0 %v1371_v24  ;;  %1375 = vmax.xlane.f32.xlu1 %v1374_v28 }
 0xadf   :  { %1381 = vmax.xlane.f32.xlu2 %v1380_v31 }
 0xae0   :  { %v1361_v15 = vpop.xlane.xlu1 %1360 }
 0xae1   :  { %v1383_v32 = vsub.f32 %v1175_v23, %v1361_v15  ;;  %1369 = vmax.xlane.f32.xlu0 %v1368_v42 }
 0xae3   :  { %v1391_v33 = vmul.f32 1.442695, %v1383_v32 }
 0xae5   :  { %2323 = vpow2.f32 %v1391_v33 }
 0xaeb   :  { %v2928_v5 = vpop.eup %2323 }
 0xaec   :  { %v1407_v34 = vsel %vm209_vm8, %v2928_v5, 0.0 }
 0xaed   :  { %1408 = vadd.xlane.f32.xlu2 %v1407_v34 }
 0xaf5   :  { %2244 = vrot.lane.b32.xlu0 %v2243_v36, %s3236_s27 }
 0xb42   :  { %v1367_v30 = vpop.xlane.xlu2 %1366 }
 0xb43   :  { %v1385_v37 = vsub.f32 %v1227_v17, %v1367_v30 }
 0xb44   :  { %v1364_v38 = vpop.xlane.xlu1 %1363 }
 0xb45   :  { %v1395_v39 = vmul.f32 1.442695, %v1385_v37  ;;  %v1384_v47 = vsub.f32 %v1201_v18, %v1364_v38 }
 0xb47   :  { %2325 = vpow2.f32 %v1395_v39  ;;  %v1393_v40 = vmul.f32 1.442695, %v1384_v47 }
 0xb49   :  { %2327 = vpow2.f32 %v1393_v40 }
 0xb4a   :  { %v1379_v41 = vpop.xlane.xlu2 %1378 }
 0xb4b   :  { %v1389_v43 = vsub.f32 %v1331_v7, %v1379_v41 }
 0xb4c   :  { %v1373_v44 = vpop.xlane.xlu0 %1372  ;;  %v1376_v50 = vpop.xlane.xlu1 %1375 }
 0xb4d   :  { %v2935_v48 = vpop.eup %2325  ;;  %v1403_v60 = vmul.f32 1.442695, %v1389_v43  ;;  %v1387_v56 = vsub.f32 %v1279_v26, %v1373_v44  ;;  %v1388_v2 = vsub.f32 %v1305_v27, %v1376_v50 }
 0xb4e   :  { %v1413_v54 = vsel %vm209_vm8, %v2935_v48, 0.0 }
 0xb4f   :  { %v2939_v62 = vpop.eup %2327  ;;  %2329 = vpow2.f32 %v1403_v60  ;;  %v1399_v59 = vmul.f32 1.442695, %v1387_v56  ;;  %1414 = vadd.xlane.f32.xlu0 %v1413_v54  ;;  %v1401_v55 = vmul.f32 1.442695, %v1388_v2 }
 0xb50   :  { %v1410_v45 = vsel %vm209_vm8, %v2939_v62, 0.0 }
 0xb51   :  { %1411 = vadd.xlane.f32.xlu2 %v1410_v45  ;;  %2331 = vpow2.f32 %v1399_v59 }
 0xb52   :  { %v1382_v63 = vpop.xlane.xlu2 %1381 }
 0xb53   :  { %v1390_v8 = vsub.f32 %v1357_v29, %v1382_v63 }
 0xb54   :  { %v1370_v11 = vpop.xlane.xlu0 %1369 }
 0xb55   :  { %v2943_v46 = vpop.eup %2329  ;;  %v1405_v58 = vmul.f32 1.442695, %v1390_v8  ;;  %v1386_v23 = vsub.f32 %v1253_v49, %v1370_v11 }
 0xb56   :  { %v1425_v12 = vsel %vm209_vm8, %v2943_v46, 0.0 }
 0xb57   :  { %2333 = vpow2.f32 %v1405_v58  ;;  %1426 = vadd.xlane.f32.xlu0 %v1425_v12  ;;  %v2947_v13 = vpop.eup %2331  ;;  %v1397_v16 = vmul.f32 1.442695, %v1386_v23 }
 0xb58   :  { %2335 = vpow2.f32 %v1401_v55  ;;  %v1419_v0 = vsel %vm209_vm8, %v2947_v13, 0.0 }
 0xb59   :  { %1420 = vadd.xlane.f32.xlu1 %v1419_v0  ;;  %2337 = vpow2.f32 %v1397_v16 }
 0xb5d   :  { %v2951_v17 = vpop.eup %2333 }
 0xb5e   :  { %v2953_v61 = vpop.eup %2335  ;;  %v1428_v18 = vsel %vm209_vm8, %v2951_v17, 0.0 }
 0xb5f   :  { %1429 = vadd.xlane.f32.xlu0 %v1428_v18  ;;  %v1422_v19 = vsel %vm209_vm8, %v2953_v61, 0.0  ;;  %v2959_v57 = vpop.eup %2337 }
 0xb60   :  { %v1416_v9 = vsel %vm209_vm8, %v2959_v57, 0.0  ;;  %v1409_v14 = vpop.xlane.xlu2 %1408 }
 0xb61   :  { %1423 = vadd.xlane.f32.xlu1 %v1422_v19  ;;  %2339 = vrcp.f32 %v1409_v14  ;;  %vm1436_vm2 = vweird.f32 %v1409_v14 }
 0xb67   :  { %v2245_v22 = vpop.permute.xlu0 %2244  ;;  %v2340_v51 = vpop.eup %2339 }
 0xb68   :  { %v2246_v7 = vunpack.i.l.bf16 %v2245_v22  ;;  %v1432_v26 = vmul.f32 %v2340_v51, %v1409_v14  ;;  %vm1437_vm1 = vweird.f32 %v2340_v51  ;;  %v2247_v33 = vunpack.i.h.bf16 %v2245_v22 }
 0xb69   :  { %2239 = vrot.lane.b32.xlu2 %v2238_v21, %s3236_s27  ;;  %1417 = vadd.xlane.f32.xlu1 %v1416_v9  ;;  %vm1438_vm3 = vmor %vm1436_vm2, %vm1437_vm1 }
 0xb6a   :  { %1650 = vmatpush.msra.mxu3 %v2246_v7  ;;  %v1433_v27 = vsub.f32 1.0, %v1432_v26 }
 0xb6c   :  { %v1434_v20 = vmul.f32 %v2340_v51, %v1433_v27 }
 0xb6e   :  { %v1435_v24 = vadd.f32 %v2340_v51, %v1434_v20 }
 0xb70   :  { %v1439_v29 = vsel %vm1438_vm3, %v2340_v51, %v1435_v24 }
 0xb71   :  { %1733 = vrot.lane.b32.xlu2 %v2877_v4, %s3236_s27  ;;  %v1442_v4 = vand.u32 2147483648, %v1409_v14 }
 0xb73   :  { %1681 = vrot.lane.b32.xlu0 %v2883_v6, %s3236_s27  ;;  %v1440_v6 = vand.u32 2147483647, %v1409_v14  ;;  %v1443_v3 = vor.u32 1.1754944e-38, %v1442_v4 }
 0xb75   :  { %vm1441_vm4 = vcmp.eq.f32.partialorder %v1440_v6, 8.507059e+37 }
 0xb76   :  { %v1444_v15 = vsel %vm1441_vm4, %v1443_v3, %v1439_v29 }
 0xb77   :  { %v1445_v47 = vmul.f32 %v2928_v5, %v1444_v15 }
 0xb82   :  { %2249 = vrot.lane.b32.xlu1 %v2248_v25, %s3236_s27 }
 0xbc2   :  { %v1415_v35 = vpop.xlane.xlu0 %1414 }
 0xbc3   :  { %2341 = vrcp.f32 %v1415_v35  ;;  %v1472_v34 = vand.u32 2147483648, %v1415_v35  ;;  %v1470_v39 = vand.u32 2147483647, %v1415_v35  ;;  %vm1466_vm7 = vweird.f32 %v1415_v35 }
 0xbc4   :  { %v2973_v28 = vpop.xlane.xlu2 %1411 }
 0xbc5   :  { %v1473_v43 = vor.u32 1.1754944e-38, %v1472_v34  ;;  %vm1471_vm10 = vcmp.eq.f32.partialorder %v1470_v39, 8.507059e+37  ;;  %vm1451_vm3 = vweird.f32 %v2973_v28  ;;  %v1457_v3 = vand.u32 2147483648, %v2973_v28 }
 0xbc9   :  { %v2342_v1 = vpop.eup %2341 }
 0xbca   :  { %v1462_v49 = vmul.f32 %v2342_v1, %v1415_v35  ;;  %v1427_v31 = vpop.xlane.xlu0 %1426  ;;  %vm1467_vm5 = vweird.f32 %v2342_v1 }
 0xbcb   :  { %2343 = vrcp.f32 %v1427_v31  ;;  %vm1468_vm9 = vmor %vm1466_vm7, %vm1467_vm5  ;;  %v1532_v2 = vand.u32 2147483648, %v1427_v31  ;;  %v1530_v63 = vand.u32 2147483647, %v1427_v31  ;;  %vm1526_vm12 = vweird.f32 %v1427_v31 }
 0xbcc   :  { %v1463_v42 = vsub.f32 1.0, %v1462_v49  ;;  %v2240_v32 = vpop.permute.xlu2 %2239  ;;  %v2975_v37 = vpop.xlane.xlu1 %1420  ;;  %2345 = vrcp.f32 %v2973_v28 }
 0xbcd   :  { %v2242_v36 = vunpack.i.h.bf16 %v2240_v32  ;;  %v2241_v30 = vunpack.i.l.bf16 %v2240_v32  ;;  %2347 = vrcp.f32 %v2975_v37  ;;  %v1533_v58 = vor.u32 1.1754944e-38, %v1532_v2 }
 0xbce   :  { %v1464_v38 = vmul.f32 %v2342_v1, %v1463_v42  ;;  %vm1531_vm1 = vcmp.eq.f32.partialorder %v1530_v63, 8.507059e+37  ;;  %v1502_v34 = vand.u32 2147483648, %v2975_v37  ;;  %v1500_v39 = vand.u32 2147483647, %v2975_v37 }
 0xbcf   :  { %1572 = vmatpush.msrb.mxu0 %v2242_v36  ;;  %1624 = vmatpush.msrb.mxu2 %v2241_v30 }
 0xbd0   :  { %v1465_v40 = vadd.f32 %v2342_v1, %v1464_v38  ;;  %2175 = vmatmul.msk.f32.vlgmr.msrb.gmra.mxu0 %vm209_vm8, %v1445_v47 }
 0xbd1   :  { %1728 = vmatpush.msra.mxu2 %v2247_v33  ;;  %v2344_v41 = vpop.eup %2343 }
 0xbd2   :  { %v1469_v44 = vsel %vm1468_vm9, %v2342_v1, %v1465_v40  ;;  %v1522_v60 = vmul.f32 %v2344_v41, %v1427_v31  ;;  %vm1527_vm11 = vweird.f32 %v2344_v41  ;;  %v2983_v8 = vpop.xlane.xlu0 %1429  ;;  %v2988_v12 = vpop.eup %2345  ;;  %v1455_v1 = vand.u32 2147483647, %v2973_v28 }
 0xbd3   :  { %v1474_v50 = vsel %vm1471_vm10, %v1473_v43, %v1469_v44  ;;  %vm1528_vm15 = vmor %vm1526_vm12, %vm1527_vm11  ;;  %2349 = vrcp.f32 %v2983_v8  ;;  %v2991_v0 = vpop.eup %2347  ;;  %v1447_v19 = vmul.f32 %v2988_v12, %v2973_v28  ;;  %vm1452_vm5 = vweird.f32 %v2988_v12 }
 0xbd4   :  { %v1523_v56 = vsub.f32 1.0, %v1522_v60  ;;  %v1734_v54 = vpop.permute.xlu2 %1733  ;;  %v1475_v59 = vmul.f32 %v2935_v48, %v1474_v50  ;;  %v2980_v5 = vpop.xlane.xlu1 %1423  ;;  %v1492_v21 = vmul.f32 %v2991_v0, %v2975_v37  ;;  %vm1497_vm7 = vweird.f32 %v2991_v0  ;;  %vm3016_vm12 = vmor %vm1451_vm3, %vm1452_vm5 }
 0xbd5   :  { %1754 = vmatpush.msrb.mxu3 %v1734_v54  ;;  %v1448_v9 = vsub.f32 1.0, %v1447_v19  ;;  %v1547_v47 = vand.u32 2147483648, %v2983_v8  ;;  %v1545_v28 = vand.u32 2147483647, %v2983_v8  ;;  %v1458_v44 = vor.u32 1.1754944e-38, %v1457_v3 }
 0xbd6   :  { %v1524_v45 = vmul.f32 %v2344_v41, %v1523_v56  ;;  %2177 = vmatmul.msk.f32.vlgmr.msrb.gmra.mxu2 %vm209_vm8, %v1475_v59  ;;  %v1503_v60 = vor.u32 1.1754944e-38, %v1502_v34  ;;  %vm1501_vm5 = vcmp.eq.f32.partialorder %v1500_v39, 8.507059e+37 }
 0xbd7   :  { %v1449_v27 = vmul.f32 %v2988_v12, %v1448_v9  ;;  %v1548_v56 = vor.u32 1.1754944e-38, %v1547_v47 }
 0xbd8   :  { %v1525_v55 = vadd.f32 %v2344_v41, %v1524_v45 }
 0xbd9   :  { %v2350_v18 = vpop.eup %2349  ;;  %v1450_v31 = vadd.f32 %v2988_v12, %v1449_v27 }
 0xbda   :  { %v1529_v48 = vsel %vm1528_vm15, %v2344_v41, %v1525_v55  ;;  %v1537_v22 = vmul.f32 %v2350_v18, %v2983_v8  ;;  %vm1542_vm11 = vweird.f32 %v2350_v18  ;;  %vm1496_vm15 = vweird.f32 %v2975_v37 }
 0xbdb   :  { %v1534_v11 = vsel %vm1531_vm1, %v1533_v58, %v1529_v48  ;;  %vm3026_vm1 = vmor %vm1496_vm15, %vm1497_vm7  ;;  %v1454_v43 = vsel %vm3016_vm12, %v2988_v12, %v1450_v31  ;;  %vm1546_vm7 = vcmp.eq.f32.partialorder %v1545_v28, 8.507059e+37  ;;  %v1515_v48 = vand.u32 2147483647, %v2980_v5 }
 0xbdc   :  { %v1535_v23 = vmul.f32 %v2943_v46, %v1534_v11  ;;  %v1418_v16 = vpop.xlane.xlu1 %1417  ;;  %v1493_v46 = vsub.f32 1.0, %v1492_v21  ;;  %v1538_v51 = vsub.f32 1.0, %v1537_v22 }
 0xbdd   :  { %2351 = vrcp.f32 %v1418_v16  ;;  %v1487_v35 = vand.u32 2147483648, %v1418_v16  ;;  %v1485_v6 = vand.u32 2147483647, %v1418_v16  ;;  %vm1481_vm4 = vweird.f32 %v1418_v16 }
 0xbde   :  { %2181 = vmatmul.msk.f32.vlgmr.msra.gmra.mxu2 %vm209_vm8, %v1535_v23  ;;  %2353 = vrcp.f32 %v2980_v5  ;;  %v1494_v20 = vmul.f32 %v2991_v0, %v1493_v46  ;;  %v1539_v29 = vmul.f32 %v2350_v18, %v1538_v51  ;;  %vm1516_vm12 = vcmp.eq.f32.partialorder %v1515_v48, 8.507059e+37  ;;  %v2186_v46 = vld [vmem:[%s3201_s6 + $0x38] sm:$0xff]  ;;  %v2183_v51 = vld [vmem:[%s3201_s6 + $0x20] sm:$0xff] }
 0xbdf   :  { %v1488_v15 = vor.u32 1.1754944e-38, %v1487_v35  ;;  %vm1486_vm10 = vcmp.eq.f32.partialorder %v1485_v6, 8.507059e+37 }
 0xbe0   :  { %v1495_v42 = vadd.f32 %v2991_v0, %v1494_v20  ;;  %v1540_v36 = vadd.f32 %v2350_v18, %v1539_v29 }
 0xbe2   :  { %v1499_v37 = vsel %vm3026_vm1, %v2991_v0, %v1495_v42 }
 0xbe3   :  { %v2352_v7 = vpop.eup %2351  ;;  %v1504_v59 = vsel %vm1501_vm5, %v1503_v60, %v1499_v37 }
 0xbe4   :  { %v1477_v25 = vmul.f32 %v2352_v7, %v1418_v16  ;;  %v3000_v14 = vpop.eup %2353  ;;  %vm1482_vm2 = vweird.f32 %v2352_v7  ;;  %v1505_v12 = vmul.f32 %v2947_v13, %v1504_v59 }
 0xbe5   :  { %v1507_v24 = vmul.f32 %v3000_v14, %v2980_v5  ;;  %vm1483_vm9 = vmor %vm1481_vm4, %vm1482_vm2  ;;  %vm1541_vm2 = vweird.f32 %v2983_v8  ;;  %vm1456_vm4 = vcmp.eq.f32.partialorder %v1455_v1, 8.507059e+37  ;;  %v1517_v8 = vand.u32 2147483648, %v2980_v5  ;;  %v1682_v16 = vpop.permute.xlu0 %1681 }
 0xbe6   :  { %v1478_v26 = vsub.f32 1.0, %v1477_v25  ;;  %vm1543_vm3 = vmor %vm1541_vm2, %vm1542_vm11  ;;  %v1459_v54 = vsel %vm1456_vm4, %v1458_v44, %v1454_v43  ;;  %v2185_v25 = vld [vmem:[%s3201_s6 + $0x30] sm:$0xff] }
 0xbe7   :  { %v1508_v32 = vsub.f32 1.0, %v1507_v24  ;;  %v1544_v50 = vsel %vm1543_vm3, %v2350_v18, %v1540_v36  ;;  %v1460_v11 = vmul.f32 %v2939_v62, %v1459_v54  ;;  %v1518_v18 = vor.u32 1.1754944e-38, %v1517_v8  ;;  %v2192_v54 = vld [vmem:[%s3205_s10 + $0x20] sm:$0xff] }
 0xbe8   :  { %v1479_v4 = vmul.f32 %v2352_v7, %v1478_v26  ;;  %v1549_v2 = vsel %vm1546_vm7, %v1548_v56, %v1544_v50  ;;  %v2194_v50 = vld [vmem:[%s3205_s10 + $0x30] sm:$0xff]  ;;  %v2193_v56 = vld [vmem:[%s3205_s10 + $0x28] sm:$0xff] }
 0xbe9   :  { %v1550_v23 = vmul.f32 %v2951_v17, %v1549_v2 }
 0xbea   :  { %v1480_v49 = vadd.f32 %v2352_v7, %v1479_v4 }
 0xbec   :  { %v1484_v33 = vsel %vm1483_vm9, %v2352_v7, %v1480_v49  ;;  %vm1512_vm9 = vweird.f32 %v3000_v14 }
 0xbed   :  { %v1489_v30 = vsel %vm1486_vm10, %v1488_v15, %v1484_v33  ;;  %vm1511_vm10 = vweird.f32 %v2980_v5  ;;  %v2264_v15 = vld [vmem:[%s3200_s7 + $0x1] ss:$0 sm:$0xff] }
 0xbee   :  { %v1490_v40 = vmul.f32 %v2959_v57, %v1489_v30  ;;  %v1509_v57 = vmul.f32 %v3000_v14, %v1508_v32  ;;  %vm1513_vm11 = vmor %vm1511_vm10, %vm1512_vm9  ;;  %vm2059_vm10 = vcmask 1041409  }
 0xbf0   :  { %2178 = vmatmul.msk.f32.vlgmr.msra.gmra.mxu3 %vm209_vm8, %v1490_v40  ;;  %v1510_v45 = vadd.f32 %v3000_v14, %v1509_v57 }
 0xbf2   :  { %v1514_v0 = vsel %vm1513_vm11, %v3000_v14, %v1510_v45  ;;  %v2184_v14 = vld [vmem:[%s3201_s6 + $0x28] sm:$0xff] }
 0xbf3   :  { %v1519_v62 = vsel %vm1516_vm12, %v1518_v18, %v1514_v0 }
 0xbf4   :  { %v2250_v63 = vpop.permute.xlu1 %2249  ;;  %v1520_v13 = vmul.f32 %v2953_v61, %v1519_v62  ;;  %v2265_v62 = vld [vmem:[%s3202_s8 + $0x1] ss:$0 sm:$0xff] }
 0xbf5   :  { %v2252_v55 = vunpack.i.h.bf16 %v2250_v63  ;;  %v2251_v58 = vunpack.i.l.bf16 %v2250_v63 }
 0xbf7   :  { %1598 = vmatpush.msrb.mxu1 %v2251_v58  ;;  %1676 = vmatpush.msra.mxu0 %v2252_v55 }
 0xbf8   :  { %2176 = vmatmul.msk.f32.vlgmr.msrb.gmra.mxu1 %vm209_vm8, %v1460_v11  ;;  %2179 = vmatmul.msk.f32.vlgmr.msra.gmra.mxu0 %vm209_vm8, %v1505_v12 }
 0xbf9   :  { %1702 = vmatpush.msra.mxu1 %v1682_v16  ;;  %2182 = vmatmul.msk.f32.vlgmr.msrb.gmra.mxu3 %vm209_vm8, %v1550_v23 }
 0xbfa   :  { %1817 = vmatpush.msrb.mxu0 %v2186_v46 }
 0xbfc   :  { %1818 = vmatpush.msrb.mxu0 %v2185_v25 }
 0xbfe   :  { %1819 = vmatpush.msrb.mxu0 %v2184_v14 }
 0xc00   :  { %2180 = vmatmul.msk.f32.vlgmr.msra.gmra.mxu1 %vm209_vm8, %v1520_v13  ;;  %1820 = vmatpush.msrb.mxu0 %v2183_v51 }
 0xc4d   :  { %v1574_v19 = vpop.f32.mrf.mxu0 }
 0xc59   :  { %v1626_v5 = vpop.f32.mrf.mxu2 }
 0xc5a   :  { %1761 = vrot.lane.b32.xlu2 %v1626_v5, %s3241_s28 }
 0xc61   :  { %v1730_v17 = vpop.f32.mrf.mxu2 }
 0xc62   :  { %1777 = vrot.lane.b32.xlu1 %v1730_v17, %s3242_s4 }
 0xc73   :  { %v1652_v21 = vpop.f32.mrf.mxu3 }
 0xc74   :  { %1763 = vrot.lane.b32.xlu2 %v1652_v21, %s3241_s28 }
 0xc75   :  { %v1600_v22 = vpop.f32.mrf.mxu1  ;;  %v1678_v7 = vpop.f32.mrf.mxu0 }
 0xc76   :  { %1769 = vrot.lane.b32.xlu0 %v1678_v7, %s3243_s29 }
 0xc7c   :  { %v1756_v9 = vpop.f32.mrf.mxu3 }
 0xc7d   :  { %1779 = vrot.lane.b32.xlu1 %v1756_v9, %s3242_s4  ;;  %v1704_v61 = vpop.f32.mrf.mxu1 }
 0xc7e   :  { %1771 = vrot.lane.b32.xlu0 %v1704_v61, %s3243_s29 }
 0xcb4   :  { %v1762_v26 = vpop.permute.xlu2 %1761 }
 0xcb5   :  { %v1783_v27 = vsel %vm209_vm8, %v1574_v19, %v1762_v26  ;;  %v2266_v19 = vld [vmem:[%s3203_s9 + $0x1] ss:$0 sm:$0xff]  ;;  %v2206_v26 = vld [vmem:[%s3207_s12 + $0x78] sm:$0xff] }
 0xcb6   :  { %1973 = vmatpush.msrb.mxu2 %v2206_v26 }
 0xcce   :  { %v1764_v6 = vpop.permute.xlu2 %1763 }
 0xccf   :  { %v1784_v29 = vsel %vm209_vm8, %v1600_v22, %v1764_v6  ;;  %v2200_v6 = vld [vmem:[%s3207_s12 + $0x48] sm:$0xff] }
 0xcd4   :  { %v1778_v35 = vpop.permute.xlu1 %1777 }
 0xce8   :  { %v1770_v20 = vpop.permute.xlu0 %1769 }
 0xce9   :  { %v1785_v24 = vsel %vm842_vm13, %v1783_v27, %v1770_v20  ;;  %v2205_v27 = vld [vmem:[%s3207_s12 + $0x70] sm:$0xff]  ;;  %v2204_v20 = vld [vmem:[%s3207_s12 + $0x68] sm:$0xff] }
 0xcea   :  { %v1787_v4 = vsel %vm845_vm14, %v1785_v24, %v1778_v35  ;;  %1974 = vmatpush.msrb.mxu2 %v2205_v27  ;;  %v2203_v35 = vld [vmem:[%s3207_s12 + $0x60] sm:$0xff]  ;;  %v2202_v24 = vld [vmem:[%s3207_s12 + $0x58] sm:$0xff] }
 0xceb   :  { %2188 = vmatmul.msk.f32.vlgmr.msrb.gmra.mxu0 %vm69_vm0, %v1787_v4  ;;  %v2201_v4 = vld [vmem:[%s3207_s12 + $0x50] sm:$0xff] }
 0xcec   :  { %1975 = vmatpush.msrb.mxu2 %v2204_v20 }
 0xcee   :  { %1976 = vmatpush.msrb.mxu2 %v2203_v35 }
 0xcef   :  { %v1780_v3 = vpop.permute.xlu1 %1779 }
 0xcf0   :  { %v1772_v1 = vpop.permute.xlu0 %1771  ;;  %1977 = vmatpush.msrb.mxu2 %v2202_v24 }
 0xcf1   :  { %v1786_v49 = vsel %vm842_vm13, %v1784_v29, %v1772_v1  ;;  %v2199_v29 = vld [vmem:[%s3207_s12 + $0x40] sm:$0xff] }
 0xcf2   :  { %v1788_v31 = vsel %vm845_vm14, %v1786_v49, %v1780_v3  ;;  %1978 = vmatpush.msrb.mxu2 %v2201_v4  ;;  %v2267_v1 = vld [vmem:[%s3204_s11 + $0x1] ss:$0 sm:$0xff] }
 0xcf3   :  { %2189 = vmatmul.msk.f32.gmra.mxu0 %vm69_vm0, %v1788_v31 }
 0xcf4   :  { %1979 = vmatpush.msrb.mxu2 %v2200_v6 }
 0xcf6   :  { %1980 = vmatpush.msrb.mxu2 %v2199_v29 }
 0xd68   :  { %v1822_v42 = vpop.f32.mrf.mxu0 }
 0xd69   :  { %v1823_v32 = vadd.f32 %v2264_v15, %v1822_v42 }
 0xd6b   :  { %v1828_v33 = vadd.f32 %v1823_v32, %v2832_v52 }
 0xd6d   :  { %v1834_v34 = vsel %vm69_vm0, %v1828_v33, 0.0 }
 0xd6e   :  { %1835 = vadd.xlane.f32.xlu2 %v1834_v34 }
 0xd70   :  { %v1825_v36 = vpop.f32.mrf.mxu0 }
 0xd71   :  { %v1826_v30 = vadd.f32 %v2264_v15, %v1825_v36 }
 0xd73   :  { %v1829_v38 = vadd.f32 %v1826_v30, %v2836_v53  ;;  %v2195_v53 = vld [vmem:[%s3205_s10 + $0x38] sm:$0xff] }
 0xd74   :  { %1916 = vmatpush.msrb.mxu1 %v2195_v53  ;;  %v2268_v53 = vld [vmem:[%s3206_s13 + $0x1] ss:$0 sm:$0xff] }
 0xd75   :  { %v1837_v39 = vsel %vm69_vm0, %v1829_v38, 0.0 }
 0xd76   :  { %1838 = vadd.xlane.f32.xlu0 %v1837_v39  ;;  %1917 = vmatpush.msrb.mxu1 %v2194_v50 }
 0xd78   :  { %1918 = vmatpush.msrb.mxu1 %v2193_v56 }
 0xd7a   :  { %1919 = vmatpush.msrb.mxu1 %v2192_v54 }
 0xde1   :  { %v1836_v47 = vpop.xlane.xlu2 %1835 }
 0xde2   :  { %v1840_v40 = vmul.f32 %v1836_v47, %v2491_v10 }
 0xde4   :  { %v1842_v41 = vsub.f32 %v1828_v33, %v1840_v40 }
 0xde6   :  { %v1844_v28 = vmul.f32 %v1842_v41, %v1842_v41 }
 0xde8   :  { %v1846_v43 = vsel %vm69_vm0, %v1844_v28, 0.0 }
 0xde9   :  { %1847 = vadd.xlane.f32.xlu1 %v1846_v43  ;;  %v1839_v37 = vpop.xlane.xlu0 %1838 }
 0xdea   :  { %v1841_v52 = vmul.f32 %v1839_v37, %v2491_v10 }
 0xdec   :  { %v1843_v57 = vsub.f32 %v1829_v38, %v1841_v52 }
 0xdee   :  { %v1845_v44 = vmul.f32 %v1843_v57, %v1843_v57 }
 0xdf0   :  { %v1849_v60 = vsel %vm69_vm0, %v1845_v44, 0.0 }
 0xdf1   :  { %1850 = vadd.xlane.f32.xlu2 %v1849_v60 }
 0xe5c   :  { %v1848_v59 = vpop.xlane.xlu1 %1847 }
 0xe5d   :  { %v1852_v2 = vmul.f32 %v1848_v59, %v2491_v10 }
 0xe5f   :  { %v1854_v45 = vadd.f32 1e-12, %v1852_v2 }
 0xe61   :  { %2355 = vrsqrt.f32 %v1854_v45  ;;  %vm1862_vm13 = vweird.f32 %v1854_v45 }
 0xe64   :  { %v1851_v63 = vpop.xlane.xlu2 %1850 }
 0xe65   :  { %v1853_v8 = vmul.f32 %v1851_v63, %v2491_v10 }
 0xe67   :  { %v2356_v55 = vpop.eup %2355  ;;  %v1855_v58 = vadd.f32 1e-12, %v1853_v8 }
 0xe68   :  { %v1857_v48 = vmul.f32 %v2356_v55, %v1854_v45  ;;  %vm1863_vm8 = vweird.f32 %v2356_v55 }
 0xe69   :  { %2357 = vrsqrt.f32 %v1855_v58  ;;  %vm1864_vm14 = vmor %vm1862_vm13, %vm1863_vm8  ;;  %vm1872_vm1 = vweird.f32 %v1855_v58 }
 0xe6a   :  { %v1858_v11 = vmul.f32 %v2356_v55, %v1857_v48 }
 0xe6c   :  { %v1859_v12 = vmul.f32 0.5, %v1858_v11 }
 0xe6e   :  { %v1860_v23 = vsub.f32 1.5, %v1859_v12 }
 0xe6f   :  { %v2358_v0 = vpop.eup %2357 }
 0xe70   :  { %v1861_v16 = vmul.f32 %v2356_v55, %v1860_v23  ;;  %v1867_v18 = vmul.f32 %v2358_v0, %v1855_v58  ;;  %vm1873_vm15 = vweird.f32 %v2358_v0 }
 0xe71   :  { %vm1874_vm2 = vmor %vm1872_vm1, %vm1873_vm15 }
 0xe72   :  { %v1865_v13 = vsel %vm1864_vm14, %v2356_v55, %v1861_v16  ;;  %v1868_v5 = vmul.f32 %v2358_v0, %v1867_v18 }
 0xe73   :  { %v1876_v17 = vmul.f32 %v1865_v13, %v1842_v41 }
 0xe74   :  { %v1869_v21 = vmul.f32 0.5, %v1868_v5 }
 0xe75   :  { %v1881_v22 = vmul.f32 %v2265_v62, %v1876_v17  ;;  %v2051_v17 = vld [vmem:[%s3211_s16 + $0x18] sm:$0xff] }
 0xe76   :  { %v1870_v7 = vsub.f32 1.5, %v1869_v21  ;;  %2075 = vmatpush.msra.mxu3 %v2051_v17 }
 0xe77   :  { %v1886_v9 = vadd.f32 %v2266_v19, %v1881_v22  ;;  %v2049_v22 = vld [vmem:[%s3211_s16 + $0x8] sm:$0xff] }
 0xe78   :  { %v1871_v61 = vmul.f32 %v2358_v0, %v1870_v7  ;;  %v2048_v7 = vld [vmem:[%s3211_s16] sm:$0xff] }
 0xe79   :  { %2197 = vmatmul.msk.f32.vlgmr.msrb.gmra.mxu1 %vm69_vm0, %v1886_v9 }
 0xe7a   :  { %v1875_v46 = vsel %vm1874_vm2, %v2358_v0, %v1871_v61 }
 0xe7b   :  { %v1877_v25 = vmul.f32 %v1875_v46, %v1843_v57 }
 0xe7d   :  { %v1882_v14 = vmul.f32 %v2265_v62, %v1877_v25 }
 0xe7f   :  { %v1887_v51 = vadd.f32 %v2266_v19, %v1882_v14  ;;  %v2050_v19 = vld [vmem:[%s3211_s16 + $0x10] sm:$0xff] }
 0xe80   :  { %2076 = vmatpush.msra.mxu3 %v2050_v19 }
 0xe81   :  { %2198 = vmatmul.msk.f32.gmra.mxu1 %vm69_vm0, %v1887_v51 }
 0xe82   :  { %2077 = vmatpush.msra.mxu3 %v2049_v22 }
 0xe84   :  { %2078 = vmatpush.msra.mxu3 %v2048_v7 }
 0xef6   :  { %v1921_v3 = vpop.f32.mrf.mxu1 }
 0xef7   :  { %v1922_v49 = vadd.f32 %v2267_v1, %v1921_v3 }
 0xef9   :  { %v1929_v31 = vmul.f32 0.044715, %v1922_v49  ;;  %v1927_v28 = vmul.f32 0.5, %v1922_v49 }
 0xefb   :  { %v1931_v15 = vmul.f32 %v1929_v31, %v1922_v49 }
 0xefd   :  { %v1933_v42 = vmul.f32 %v1931_v15, %v1922_v49 }
 0xefe   :  { %v1924_v32 = vpop.f32.mrf.mxu1 }
 0xeff   :  { %v1935_v33 = vadd.f32 %v1933_v42, %v1922_v49  ;;  %v1925_v34 = vadd.f32 %v2267_v1, %v1924_v32 }
 0xf01   :  { %v1937_v36 = vmul.f32 0.7978846, %v1935_v33  ;;  %v1930_v30 = vmul.f32 0.044715, %v1925_v34  ;;  %v1928_v57 = vmul.f32 0.5, %v1925_v34 }
 0xf02   :  { %v2270_v33 = vld [vmem:[%s3209_s15 + $0x1] ss:$0 sm:$0xff] }
 0xf03   :  { %2359 = vtanh.f32 %v1937_v36  ;;  %v1932_v38 = vmul.f32 %v1930_v30, %v1925_v34 }
 0xf05   :  { %v1934_v39 = vmul.f32 %v1932_v38, %v1925_v34 }
 0xf07   :  { %v1936_v47 = vadd.f32 %v1934_v39, %v1925_v34  ;;  %v2087_v39 = vld [vmem:[%s3213_s18 + $0x18] sm:$0xff] }
 0xf08   :  { %2107 = vmatpush.msrb.mxu3 %v2087_v39 }
 0xf09   :  { %v2360_v40 = vpop.eup %2359  ;;  %v1938_v41 = vmul.f32 0.7978846, %v1936_v47  ;;  %v2086_v47 = vld [vmem:[%s3213_s18 + $0x10] sm:$0xff] }
 0xf0a   :  { %v1941_v43 = vadd.f32 1.0, %v2360_v40  ;;  %v2085_v40 = vld [vmem:[%s3213_s18 + $0x8] sm:$0xff]  ;;  %2108 = vmatpush.msrb.mxu3 %v2086_v47 }
 0xf0b   :  { %2361 = vtanh.f32 %v1938_v41  ;;  %v2084_v41 = vld [vmem:[%s3213_s18] sm:$0xff] }
 0xf0c   :  { %v1943_v37 = vmul.f32 %v1941_v43, %v1927_v28  ;;  %2109 = vmatpush.msrb.mxu3 %v2085_v40  ;;  %v2271_v28 = vld [vmem:[%s3210_s17] ss:$0 sm:$0xff] }
 0xf0e   :  { %2208 = vmatmul.msk.f32.vlgmr.msrb.gmra.mxu2 %vm1010_vm6, %v1943_v37  ;;  %2110 = vmatpush.msrb.mxu3 %v2084_v41 }
 0xf11   :  { %v2362_v52 = vpop.eup %2361 }
 0xf12   :  { %v1942_v44 = vadd.f32 1.0, %v2362_v52 }
 0xf14   :  { %v1944_v60 = vmul.f32 %v1942_v44, %v1928_v57  ;;  %v2272_v57 = vld [vmem:[%s3212_s19] ss:$0 sm:$0xff] }
 0xf16   :  { %2209 = vmatmul.msk.f32.gmra.mxu2 %vm1010_vm6, %v1944_v60 }
 0xf91   :  { %v1982_v50 = vpop.f32.mrf.mxu2 }
 0xf92   :  { %v1983_v56 = vadd.f32 %v2268_v53, %v1982_v50 }
 0xf94   :  { %v1988_v54 = vadd.f32 %v1983_v56, %v1886_v9 }
 0xf96   :  { %v1994_v59 = vsel %vm69_vm0, %v1988_v54, 0.0 }
 0xf97   :  { %1995 = vadd.xlane.f32.xlu1 %v1994_v59 }
 0xf99   :  { %v1985_v2 = vpop.f32.mrf.mxu2 }
 0xf9a   :  { %v1986_v45 = vadd.f32 %v2268_v53, %v1985_v2 }
 0xf9c   :  { %v1989_v63 = vadd.f32 %v1986_v45, %v1887_v51 }
 0xf9e   :  { %v1997_v8 = vsel %vm69_vm0, %v1989_v63, 0.0 }
 0xf9f   :  { %1998 = vadd.xlane.f32.xlu0 %v1997_v8 }
0x100a   :  { %v1996_v55 = vpop.xlane.xlu1 %1995 }
0x100b   :  { %v2000_v58 = vmul.f32 %v1996_v55, %v2491_v10 }
0x100d   :  { %v2002_v48 = vsub.f32 %v1988_v54, %v2000_v58 }
0x100f   :  { %v2004_v11 = vmul.f32 %v2002_v48, %v2002_v48 }
0x1011   :  { %v2006_v12 = vsel %vm69_vm0, %v2004_v11, 0.0 }
0x1012   :  { %v1999_v23 = vpop.xlane.xlu0 %1998  ;;  %2007 = vadd.xlane.f32.xlu0 %v2006_v12 }
0x1013   :  { %v2001_v0 = vmul.f32 %v1999_v23, %v2491_v10 }
0x1015   :  { %v2003_v16 = vsub.f32 %v1989_v63, %v2001_v0 }
0x1017   :  { %v2005_v18 = vmul.f32 %v2003_v16, %v2003_v16 }
0x1019   :  { %v2009_v62 = vsel %vm69_vm0, %v2005_v18, 0.0 }
0x101a   :  { %2010 = vadd.xlane.f32.xlu2 %v2009_v62 }
0x1085   :  { %v2008_v13 = vpop.xlane.xlu0 %2007 }
0x1086   :  { %v2012_v5 = vmul.f32 %v2008_v13, %v2491_v10 }
0x1088   :  { %v2014_v21 = vadd.f32 1e-12, %v2012_v5 }
0x108a   :  { %2363 = vrsqrt.f32 %v2014_v21  ;;  %vm2022_vm3 = vweird.f32 %v2014_v21 }
0x108d   :  { %v2011_v9 = vpop.xlane.xlu2 %2010 }
0x108e   :  { %v2013_v61 = vmul.f32 %v2011_v9, %v2491_v10  ;;  %v2269_v10 = vld [vmem:[%s3208_s14 + $0x1] ss:$0 sm:$0xff] }
0x1090   :  { %v2364_v46 = vpop.eup %2363  ;;  %v2015_v25 = vadd.f32 1e-12, %v2013_v61 }
0x1091   :  { %v2017_v14 = vmul.f32 %v2364_v46, %v2014_v21  ;;  %vm2023_vm6 = vweird.f32 %v2364_v46 }
0x1092   :  { %2365 = vrsqrt.f32 %v2015_v25  ;;  %vm2024_vm4 = vmor %vm2022_vm3, %vm2023_vm6  ;;  %vm2032_vm7 = vweird.f32 %v2015_v25 }
0x1093   :  { %v2018_v51 = vmul.f32 %v2364_v46, %v2017_v14 }
0x1095   :  { %v2019_v26 = vmul.f32 0.5, %v2018_v51 }
0x1097   :  { %v2020_v27 = vsub.f32 1.5, %v2019_v26 }
0x1098   :  { %v2366_v20 = vpop.eup %2365 }
0x1099   :  { %v2027_v35 = vmul.f32 %v2366_v20, %v2015_v25  ;;  %v2021_v24 = vmul.f32 %v2364_v46, %v2020_v27  ;;  %vm2033_vm5 = vweird.f32 %v2366_v20 }
0x109a   :  { %vm2034_vm9 = vmor %vm2032_vm7, %vm2033_vm5 }
0x109b   :  { %v2028_v4 = vmul.f32 %v2366_v20, %v2027_v35  ;;  %v2025_v29 = vsel %vm2024_vm4, %v2364_v46, %v2021_v24 }
0x109c   :  { %v2036_v49 = vmul.f32 %v2025_v29, %v2002_v48 }
0x109d   :  { %v2029_v6 = vmul.f32 0.5, %v2028_v4 }
0x109e   :  { %v2041_v42 = vmul.f32 %v2269_v10, %v2036_v49 }
0x109f   :  { %v2030_v1 = vsub.f32 1.5, %v2029_v6 }
0x10a0   :  { %v2046_v36 = vadd.f32 %v2270_v33, %v2041_v42 }
0x10a1   :  { %v2031_v3 = vmul.f32 %v2366_v20, %v2030_v1 }
0x10a3   :  { %v2035_v31 = vsel %vm2034_vm9, %v2366_v20, %v2031_v3 }
0x10a4   :  { %v2037_v15 = vmul.f32 %v2035_v31, %v2003_v16 }
0x10a6   :  { %v2042_v32 = vmul.f32 %v2269_v10, %v2037_v15 }
0x10a8   :  { %v2047_v34 = vadd.f32 %v2270_v33, %v2042_v32 }
0x10aa   :  { %v2058_v30 = vrot.slane %v2047_v34, 7 }
0x10ac   :  { %v2060_v38 = vsel %vm2059_vm10, %v2058_v30, %v2046_v36 }
0x10ad   :  { %2212 = vmatmul.msk.f32.vlgmr.msra.gmra.mxu3 %vm69_vm0, %v2060_v38 }
0x1130   :  { %v2080_v43 = vpop.f32.mrf.mxu3 }
0x1131   :  { %v2081_v37 = vadd.f32 %v2271_v28, %v2080_v43 }
0x1133   :  { %2367 = vtanh.f32 %v2081_v37 }
0x1139   :  { %v2368_v52 = vpop.eup %2367 }
0x113a   :  { %2213 = vmatmul.msk.f32.vlgmr.msrb.gmra.mxu3 %vm69_vm0, %v2368_v52 }
0x11bd   :  { %v2112_v44 = vpop.f32.mrf.mxu3 }
0x11be   :  { %v2113_v60 = vadd.f32 %v2272_v57, %v2112_v44 }
0x11c0   :  { %2115 = vst [vmem:[%s3214_s20] sm:$0x3] %v2113_v60 }

</bundles_post_ra>
